<compile_context>
chip_gen: v5e
topology: v5e:2x2
jax: 0.10.0
libtpu: 0.0.40
codegen_flags: <defaults>
</compile_context>

<pallas_src>
import numpy as np
import jax
import jax.numpy as jnp
from jax.experimental import pallas as pl
from jax.experimental.pallas import tpu as pltpu


# ----------------------------------------------------------------------------
# Fused kernel: conv stack (3 stages) + gate projection + LSTM + fc1.
# ----------------------------------------------------------------------------
def fused_forward_kernel(x_ref, m1_ref, b1_ref, m2_ref, b2_ref, m3_ref, b3_ref,
                         wih_ref, bg_ref, whh_ref, wfc_ref, bfc_ref, o_ref):
    def stage(h, m_ref, b_ref):
        # conv3x3(pad=1) as one dense matmul (bf16 operands, f32 accumulate);
        # 2x2 max-pool = elementwise max over 4 contiguous lane blocks of
        # width q; bias added after the max (valid: constant shift, no ReLU).
        y = jnp.dot(h, m_ref[...], preferred_element_type=jnp.float32)
        q = b_ref.shape[1]
        pooled = jnp.maximum(jnp.maximum(y[:, 0:q], y[:, q:2 * q]),
                             jnp.maximum(y[:, 2 * q:3 * q], y[:, 3 * q:4 * q]))
        return (pooled + b_ref[...]).astype(jnp.bfloat16)

    h = stage(x_ref[...], m1_ref, b1_ref)          # (N, 256)  4x4x16
    h = stage(h, m2_ref, b2_ref)                   # (N, 128)  2x2x32
    h = stage(h, m3_ref, b3_ref)                   # (N, 128)  1x1x(64 pad 128)

    # Hoisted LSTM input projection -> lane-dense (N, 4*Hd=128) gate preacts.
    gx = (jnp.dot(h, wih_ref[...], preferred_element_type=jnp.float32)
          + bg_ref[...])

    Hd = whh_ref.shape[0]
    B = o_ref.shape[0]
    T = x_ref.shape[0] // B
    whh = whh_ref[...]
    hb = jnp.zeros((B, Hd), jnp.float32)
    cb = jnp.zeros((B, Hd), jnp.float32)
    for t in range(T):                             # T static -> fully unrolled
        g = gx[t * B:(t + 1) * B, :] + jnp.dot(
            hb, whh, preferred_element_type=jnp.float32)
        sg = jax.nn.sigmoid(g)                     # one EUP pass, full 128 lanes
        th = jnp.tanh(g)                           # one EUP pass, full 128 lanes
        i_g = sg[:, 0 * Hd:1 * Hd]                 # PyTorch gate order i,f,g,o
        f_g = sg[:, 1 * Hd:2 * Hd]
        g_g = th[:, 2 * Hd:3 * Hd]
        o_g = sg[:, 3 * Hd:4 * Hd]
        cb = f_g * cb + i_g * g_g
        hb = o_g * jnp.tanh(cb)
    o_ref[...] = (jnp.dot(hb, wfc_ref[...], preferred_element_type=jnp.float32)
                  + bfc_ref[...])                  # (B, 128) lane-dense store


# ----------------------------------------------------------------------------
# Wrapper glue: fold conv3x3(pad=1)+maxpool2 into dense operators.
# ----------------------------------------------------------------------------
def _conv_pool_structure(H, W):
    """0/1 tensor S[p_in, k*Ms+m, dy, dx] = 1 iff input pixel p_in (row-major)
    is tap (dy,dx) of the conv evaluated at pre-pool position
    (pool offset k=py*2+px, pooled pixel m=i*Wo+j), with zero padding."""
    Ho, Wo = H // 2, W // 2
    Ms = Ho * Wo
    S = np.zeros((H * W, 4 * Ms, 3, 3), np.float32)
    for i in range(Ho):
        for j in range(Wo):
            m = i * Wo + j
            for py in range(2):
                for px in range(2):
                    q = (py * 2 + px) * Ms + m
                    for dy in range(3):
                        for dx in range(3):
                            r = 2 * i + py + dy - 1
                            c = 2 * j + px + dx - 1
                            if 0 <= r < H and 0 <= c < W:
                                S[r * W + c, q, dy, dx] = 1.0
    return S


def _conv_pool_operator(w, H, W):
    """(Cout,Cin,3,3) conv weight -> dense (H*W*Cin, 4*Ho*Wo*Cout) matrix with
    rows ordered (pixel row-major, cin) and cols (pool offset, pixel, cout)."""
    S = jnp.asarray(_conv_pool_structure(H, W))
    M = jnp.einsum("pqyx,oiyx->piqo", S, w, precision=jax.lax.Precision.HIGHEST)
    Cout = w.shape[0]
    return M.reshape(H * W * w.shape[1], S.shape[1] * Cout)


def forward(x, params):
    """x: (B, T, C=1, H, W) float32 (PyTorch layout). Returns (B, num_classes)."""
    B, T, C, H, W = x.shape
    N = B * T
    assert (H // 8, W // 8) == (1, 1), "LSTM(input=64) requires H = W = 8"
    LANES = 128
    (w1, b1), (w2, b2), (w3, b3) = params["convs"]
    Hd = params["lstm_whh"].shape[1]
    G = 4 * Hd
    NC = params["fc1_w"].shape[0]
    D = C * H * W
    assert D <= LANES

    # Time-major frames (t, b) -> contiguous per-step gate rows in-kernel;
    # NHWC-flatten; pad feature dim 64->128 (full MXU K on v5e); bf16 operands.
    x_tm = jnp.transpose(x, (1, 0, 2, 3, 4)).reshape(N, C, H, W)
    x2 = jnp.transpose(x_tm, (0, 2, 3, 1)).reshape(N, D)
    x2 = jnp.pad(x2, ((0, 0), (0, LANES - D))).astype(jnp.bfloat16)

    # Folded conv+pool operators (bf16), stage-3 Cout padded 64->128 so the
    # pool slices and the following wih projection are 128-lane aligned.
    COP = LANES
    w3p = jnp.zeros((COP,) + w3.shape[1:], w3.dtype).at[:w3.shape[0]].set(w3)
    b3p = jnp.zeros((COP,), b3.dtype).at[:b3.shape[0]].set(b3)
    m1 = jnp.pad(_conv_pool_operator(w1, H, W), ((0, LANES - D), (0, 0)))
    m2 = _conv_pool_operator(w2, H // 2, W // 2)
    m3 = _conv_pool_operator(w3p, H // 4, W // 4)
    m1, m2, m3 = (m.astype(jnp.bfloat16) for m in (m1, m2, m3))

    bb1 = jnp.tile(b1, (H // 2) * (W // 2)).reshape(1, -1)       # (1, 256) f32
    bb2 = jnp.tile(b2, (H // 4) * (W // 4)).reshape(1, -1)       # (1, 128) f32
    bb3 = jnp.tile(b3p, (H // 8) * (W // 8)).reshape(1, -1)      # (1, 128) f32

    # Hoisted LSTM input projection (rows padded to h3's 128-lane layout).
    wih_t = jnp.zeros((COP, G), jnp.float32).at[:w3.shape[0], :].set(
        params["lstm_wih"].T).astype(jnp.bfloat16)
    b_gate = (params["lstm_bih"] + params["lstm_bhh"]).reshape(1, G)

    whh_t = params["lstm_whh"].T                                 # (Hd, 4*Hd)
    P = LANES                                                    # lane-dense fc1
    wfc = jnp.zeros((Hd, P), jnp.float32).at[:, :NC].set(params["fc1_w"].T)
    bfc = jnp.zeros((1, P), jnp.float32).at[:, :NC].set(params["fc1_b"])

    args = (x2, m1, bb1, m2, bb2, m3, bb3, wih_t, b_gate, whh_t, wfc, bfc)

    flops = (2 * N * (m1.shape[0] * m1.shape[1] + m2.shape[0] * m2.shape[1]
                      + m3.shape[0] * m3.shape[1] + COP * G)
             + 2 * T * B * (Hd * G + Hd * P))
    transcendentals = T * B * (2 * G + Hd)
    bytes_accessed = int(sum(a.size * a.dtype.itemsize for a in args) + B * P * 4)

    out = pl.pallas_call(
        fused_forward_kernel,
        out_shape=jax.ShapeDtypeStruct((B, P), jnp.float32),
        grid=(1,),
        in_specs=[pl.BlockSpec(a.shape, lambda i: (0, 0)) for a in args],
        out_specs=pl.BlockSpec((B, P), lambda i: (0, 0)),
        compiler_params=pltpu.CompilerParams(dimension_semantics=("arbitrary",)),
        cost_estimate=pl.CostEstimate(flops=int(flops),
                                      transcendentals=int(transcendentals),
                                      bytes_accessed=bytes_accessed),
    )(*args)
    # TODO(synk): nn.Dropout layers are identity at inference; fc2 is unused in
    # the reference forward() and therefore not implemented.
    return out[:, :NC]


# ----------------------------------------------------------------------------
# Pure-JAX reference (high precision) for the correctness check.
# ----------------------------------------------------------------------------
def reference_forward(x, params):
    B, T, C, H, W = x.shape
    feat = x.reshape(B * T, C, H, W)
    for (w, b) in params["convs"]:
        feat = jax.lax.conv_general_dilated(
            feat, w, window_strides=(1, 1), padding=((1, 1), (1, 1)),
            dimension_numbers=("NCHW", "OIHW", "NCHW"),
            precision=jax.lax.Precision.HIGHEST) + b[None, :, None, None]
        feat = jax.lax.reduce_window(feat, -jnp.inf, jax.lax.max,
                                     (1, 1, 2, 2), (1, 1, 2, 2), "VALID")
    seq = feat.reshape(B, T, -1)
    wih, whh = params["lstm_wih"], params["lstm_whh"]
    bih, bhh = params["lstm_bih"], params["lstm_bhh"]
    Hd = whh.shape[1]
    dotH = lambda a, bb: jnp.dot(a, bb, precision=jax.lax.Precision.HIGHEST)
    hp = jnp.zeros((B, Hd), jnp.float32)
    cp = jnp.zeros((B, Hd), jnp.float32)
    for t in range(T):
        g = dotH(seq[:, t], wih.T) + bih + dotH(hp, whh.T) + bhh
        i_g = jax.nn.sigmoid(g[:, :Hd]); f_g = jax.nn.sigmoid(g[:, Hd:2 * Hd])
        g_g = jnp.tanh(g[:, 2 * Hd:3 * Hd]); o_g = jax.nn.sigmoid(g[:, 3 * Hd:])
        cp = f_g * cp + i_g * g_g
        hp = o_g * jnp.tanh(cp)
    return dotH(hp, params["fc1_w"].T) + params["fc1_b"]


# ----------------------------------------------------------------------------
# Deterministic parameter construction (PyTorch-style uniform fan-in init).
# ----------------------------------------------------------------------------
def make_params(key, num_classes=5, hidden=32):
    ks = jax.random.split(key, 16)

    def u(k, shape, fan_in):
        bound = 1.0 / float(np.sqrt(fan_in))
        return jax.random.uniform(k, shape, jnp.float32, -bound, bound)

    convs = [
        (u(ks[0], (16, 1, 3, 3), 1 * 9), u(ks[1], (16,), 1 * 9)),
        (u(ks[2], (32, 16, 3, 3), 16 * 9), u(ks[3], (32,), 16 * 9)),
        (u(ks[4], (64, 32, 3, 3), 32 * 9), u(ks[5], (64,), 32 * 9)),
    ]
    return {
        "convs": convs,
        "lstm_wih": u(ks[6], (4 * hidden, 64), hidden),
        "lstm_whh": u(ks[7], (4 * hidden, hidden), hidden),
        "lstm_bih": u(ks[8], (4 * hidden,), hidden),
        "lstm_bhh": u(ks[9], (4 * hidden,), hidden),
        "fc1_w": u(ks[10], (num_classes, hidden), hidden),
        "fc1_b": u(ks[11], (num_classes,), hidden),
        # fc2 exists in __init__ but is unused in forward(); omitted.
    }


if __name__ == "__main__":
    key = jax.random.PRNGKey(0)
    pkey, xkey = jax.random.split(key)

    # LSTM input size 64 requires the conv stack to collapse to 1x1 spatially
    # -> H = W = 8 (8 -> 4 -> 2 -> 1); frames N = B*T = 16, all in one tile.
    B, T, C, H, W = 2, 8, 1, 8, 8
    x = jax.random.normal(xkey, (B, T, C, H, W), dtype=jnp.float32)
    params = make_params(pkey, num_classes=5, hidden=32)

    fwd = jax.jit(forward)
    logits = jax.block_until_ready(fwd(x, params))
    assert logits.shape == (B, 5), logits.shape
    assert bool(jnp.all(jnp.isfinite(logits)))

    ref = jax.block_until_ready(reference_forward(x, params))
    np.testing.assert_allclose(np.asarray(logits), np.asarray(ref),
                               rtol=5e-2, atol=5e-2)
    print("KERNEL_OK")
</pallas_src>

<mosaic_0001>
module attributes {stable_mosaic.version = 11 : i64} {
  func.func @fused_forward_kernel(%arg0: i32, %arg1: memref<16x128xbf16, #tpu.memory_space<vmem>>, %arg2: memref<128x1024xbf16, #tpu.memory_space<vmem>>, %arg3: memref<1x256xf32, #tpu.memory_space<vmem>>, %arg4: memref<256x512xbf16, #tpu.memory_space<vmem>>, %arg5: memref<1x128xf32, #tpu.memory_space<vmem>>, %arg6: memref<128x512xbf16, #tpu.memory_space<vmem>>, %arg7: memref<1x128xf32, #tpu.memory_space<vmem>>, %arg8: memref<128x128xbf16, #tpu.memory_space<vmem>>, %arg9: memref<1x128xf32, #tpu.memory_space<vmem>>, %arg10: memref<32x128xf32, #tpu.memory_space<vmem>>, %arg11: memref<32x128xf32, #tpu.memory_space<vmem>>, %arg12: memref<1x128xf32, #tpu.memory_space<vmem>>, %arg13: memref<2x128xf32, #tpu.memory_space<vmem>>) attributes {dimension_semantics = [#tpu.dimension_semantics<arbitrary>], iteration_bounds = array<i64: 1>, scalar_prefetch = 0 : i64, scratch_operands = 0 : i64, tpu.core_type = #tpu.core_type<tc>, window_params = [{pipeline_mode = #tpu.pipeline_mode<synchronous>, transform_indices = @transform_0, window_bounds = array<i64: 16, 128>}, {pipeline_mode = #tpu.pipeline_mode<synchronous>, transform_indices = @transform_1, window_bounds = array<i64: 128, 1024>}, {pipeline_mode = #tpu.pipeline_mode<synchronous>, transform_indices = @transform_2, window_bounds = array<i64: 1, 256>}, {pipeline_mode = #tpu.pipeline_mode<synchronous>, transform_indices = @transform_3, window_bounds = array<i64: 256, 512>}, {pipeline_mode = #tpu.pipeline_mode<synchronous>, transform_indices = @transform_4, window_bounds = array<i64: 1, 128>}, {pipeline_mode = #tpu.pipeline_mode<synchronous>, transform_indices = @transform_5, window_bounds = array<i64: 128, 512>}, {pipeline_mode = #tpu.pipeline_mode<synchronous>, transform_indices = @transform_6, window_bounds = array<i64: 1, 128>}, {pipeline_mode = #tpu.pipeline_mode<synchronous>, transform_indices = @transform_7, window_bounds = array<i64: 128, 128>}, {pipeline_mode = #tpu.pipeline_mode<synchronous>, transform_indices = @transform_8, window_bounds = array<i64: 1, 128>}, {pipeline_mode = #tpu.pipeline_mode<synchronous>, transform_indices = @transform_9, window_bounds = array<i64: 32, 128>}, {pipeline_mode = #tpu.pipeline_mode<synchronous>, transform_indices = @transform_10, window_bounds = array<i64: 32, 128>}, {pipeline_mode = #tpu.pipeline_mode<synchronous>, transform_indices = @transform_11, window_bounds = array<i64: 1, 128>}, {pipeline_mode = #tpu.pipeline_mode<synchronous>, transform_indices = @transform_12, window_bounds = array<i64: 2, 128>}]} {
    %c0 = arith.constant 0 : index
    %c0_0 = arith.constant 0 : index
    %0 = vector.load %arg1[%c0, %c0_0] : memref<16x128xbf16, #tpu.memory_space<vmem>>, vector<16x128xbf16>
    %c0_1 = arith.constant 0 : index
    %c0_2 = arith.constant 0 : index
    %1 = vector.load %arg2[%c0_1, %c0_2] : memref<128x1024xbf16, #tpu.memory_space<vmem>>, vector<128x1024xbf16>
    %cst = arith.constant dense<0.000000e+00> : vector<16x1024xf32>
    %2 = tpu.matmul %0, %1, %cst {dimension_numbers = #tpu.dot_dimension_numbers<[1], [0], [0], [1], [0, 0, 1, 1], [], []>} : vector<16x128xbf16>, vector<128x1024xbf16>, vector<16x1024xf32> -> vector<16x1024xf32>
    %3 = vector.extract_strided_slice %2 {offsets = [0, 0], sizes = [16, 256], strides = [1, 1]} : vector<16x1024xf32> to vector<16x256xf32>
    %4 = vector.extract_strided_slice %2 {offsets = [0, 256], sizes = [16, 256], strides = [1, 1]} : vector<16x1024xf32> to vector<16x256xf32>
    %5 = arith.maximumf %3, %4 : vector<16x256xf32>
    %6 = vector.extract_strided_slice %2 {offsets = [0, 512], sizes = [16, 256], strides = [1, 1]} : vector<16x1024xf32> to vector<16x256xf32>
    %7 = vector.extract_strided_slice %2 {offsets = [0, 768], sizes = [16, 256], strides = [1, 1]} : vector<16x1024xf32> to vector<16x256xf32>
    %8 = arith.maximumf %6, %7 : vector<16x256xf32>
    %9 = arith.maximumf %5, %8 : vector<16x256xf32>
    %c0_3 = arith.constant 0 : index
    %c0_4 = arith.constant 0 : index
    %10 = vector.load %arg3[%c0_3, %c0_4] : memref<1x256xf32, #tpu.memory_space<vmem>>, vector<1x256xf32>
    %11 = vector.broadcast %10 : vector<1x256xf32> to vector<16x256xf32>
    %12 = arith.addf %9, %11 : vector<16x256xf32>
    %13 = arith.truncf %12 : vector<16x256xf32> to vector<16x256xbf16>
    %c0_5 = arith.constant 0 : index
    %c0_6 = arith.constant 0 : index
    %14 = vector.load %arg4[%c0_5, %c0_6] : memref<256x512xbf16, #tpu.memory_space<vmem>>, vector<256x512xbf16>
    %cst_7 = arith.constant dense<0.000000e+00> : vector<16x512xf32>
    %15 = tpu.matmul %13, %14, %cst_7 {dimension_numbers = #tpu.dot_dimension_numbers<[1], [0], [0], [1], [0, 0, 1, 1], [], []>} : vector<16x256xbf16>, vector<256x512xbf16>, vector<16x512xf32> -> vector<16x512xf32>
    %16 = vector.extract_strided_slice %15 {offsets = [0, 0], sizes = [16, 128], strides = [1, 1]} : vector<16x512xf32> to vector<16x128xf32>
    %17 = vector.extract_strided_slice %15 {offsets = [0, 128], sizes = [16, 128], strides = [1, 1]} : vector<16x512xf32> to vector<16x128xf32>
    %18 = arith.maximumf %16, %17 : vector<16x128xf32>
    %19 = vector.extract_strided_slice %15 {offsets = [0, 256], sizes = [16, 128], strides = [1, 1]} : vector<16x512xf32> to vector<16x128xf32>
    %20 = vector.extract_strided_slice %15 {offsets = [0, 384], sizes = [16, 128], strides = [1, 1]} : vector<16x512xf32> to vector<16x128xf32>
    %21 = arith.maximumf %19, %20 : vector<16x128xf32>
    %22 = arith.maximumf %18, %21 : vector<16x128xf32>
    %c0_8 = arith.constant 0 : index
    %c0_9 = arith.constant 0 : index
    %23 = vector.load %arg5[%c0_8, %c0_9] : memref<1x128xf32, #tpu.memory_space<vmem>>, vector<1x128xf32>
    %24 = vector.broadcast %23 : vector<1x128xf32> to vector<16x128xf32>
    %25 = arith.addf %22, %24 : vector<16x128xf32>
    %26 = arith.truncf %25 : vector<16x128xf32> to vector<16x128xbf16>
    %c0_10 = arith.constant 0 : index
    %c0_11 = arith.constant 0 : index
    %27 = vector.load %arg6[%c0_10, %c0_11] : memref<128x512xbf16, #tpu.memory_space<vmem>>, vector<128x512xbf16>
    %cst_12 = arith.constant dense<0.000000e+00> : vector<16x512xf32>
    %28 = tpu.matmul %26, %27, %cst_12 {dimension_numbers = #tpu.dot_dimension_numbers<[1], [0], [0], [1], [0, 0, 1, 1], [], []>} : vector<16x128xbf16>, vector<128x512xbf16>, vector<16x512xf32> -> vector<16x512xf32>
    %29 = vector.extract_strided_slice %28 {offsets = [0, 0], sizes = [16, 128], strides = [1, 1]} : vector<16x512xf32> to vector<16x128xf32>
    %30 = vector.extract_strided_slice %28 {offsets = [0, 128], sizes = [16, 128], strides = [1, 1]} : vector<16x512xf32> to vector<16x128xf32>
    %31 = arith.maximumf %29, %30 : vector<16x128xf32>
    %32 = vector.extract_strided_slice %28 {offsets = [0, 256], sizes = [16, 128], strides = [1, 1]} : vector<16x512xf32> to vector<16x128xf32>
    %33 = vector.extract_strided_slice %28 {offsets = [0, 384], sizes = [16, 128], strides = [1, 1]} : vector<16x512xf32> to vector<16x128xf32>
    %34 = arith.maximumf %32, %33 : vector<16x128xf32>
    %35 = arith.maximumf %31, %34 : vector<16x128xf32>
    %c0_13 = arith.constant 0 : index
    %c0_14 = arith.constant 0 : index
    %36 = vector.load %arg7[%c0_13, %c0_14] : memref<1x128xf32, #tpu.memory_space<vmem>>, vector<1x128xf32>
    %37 = vector.broadcast %36 : vector<1x128xf32> to vector<16x128xf32>
    %38 = arith.addf %35, %37 : vector<16x128xf32>
    %39 = arith.truncf %38 : vector<16x128xf32> to vector<16x128xbf16>
    %c0_15 = arith.constant 0 : index
    %c0_16 = arith.constant 0 : index
    %40 = vector.load %arg8[%c0_15, %c0_16] : memref<128x128xbf16, #tpu.memory_space<vmem>>, vector<128x128xbf16>
    %cst_17 = arith.constant dense<0.000000e+00> : vector<16x128xf32>
    %41 = tpu.matmul %39, %40, %cst_17 {dimension_numbers = #tpu.dot_dimension_numbers<[1], [0], [0], [1], [0, 0, 1, 1], [], []>} : vector<16x128xbf16>, vector<128x128xbf16>, vector<16x128xf32> -> vector<16x128xf32>
    %c0_18 = arith.constant 0 : index
    %c0_19 = arith.constant 0 : index
    %42 = vector.load %arg9[%c0_18, %c0_19] : memref<1x128xf32, #tpu.memory_space<vmem>>, vector<1x128xf32>
    %43 = vector.broadcast %42 : vector<1x128xf32> to vector<16x128xf32>
    %44 = arith.addf %41, %43 : vector<16x128xf32>
    %c0_20 = arith.constant 0 : index
    %c0_21 = arith.constant 0 : index
    %45 = vector.load %arg10[%c0_20, %c0_21] : memref<32x128xf32, #tpu.memory_space<vmem>>, vector<32x128xf32>
    %cst_22 = arith.constant 0.000000e+00 : f32
    %46 = vector.broadcast %cst_22 : f32 to vector<2x32xf32>
    %cst_23 = arith.constant 0.000000e+00 : f32
    %47 = vector.broadcast %cst_23 : f32 to vector<2x32xf32>
    %48 = vector.extract_strided_slice %44 {offsets = [0, 0], sizes = [2, 128], strides = [1, 1]} : vector<16x128xf32> to vector<2x128xf32>
    %cst_24 = arith.constant dense<0.000000e+00> : vector<2x128xf32>
    %49 = tpu.matmul %46, %45, %cst_24 {dimension_numbers = #tpu.dot_dimension_numbers<[1], [0], [0], [1], [0, 0, 1, 1], [], []>} : vector<2x32xf32>, vector<32x128xf32>, vector<2x128xf32> -> vector<2x128xf32>
    %50 = arith.addf %48, %49 : vector<2x128xf32>
    %51 = arith.negf %50 : vector<2x128xf32>
    %52 = math.exp %51 : vector<2x128xf32>
    %cst_25 = arith.constant 1.000000e+00 : f32
    %53 = vector.broadcast %cst_25 : f32 to vector<2x128xf32>
    %54 = arith.addf %53, %52 : vector<2x128xf32>
    %55 = arith.divf %53, %54 : vector<2x128xf32>
    %56 = math.tanh %50 : vector<2x128xf32>
    %57 = vector.extract_strided_slice %55 {offsets = [0, 0], sizes = [2, 32], strides = [1, 1]} : vector<2x128xf32> to vector<2x32xf32>
    %58 = vector.extract_strided_slice %55 {offsets = [0, 32], sizes = [2, 32], strides = [1, 1]} : vector<2x128xf32> to vector<2x32xf32>
    %59 = vector.extract_strided_slice %56 {offsets = [0, 64], sizes = [2, 32], strides = [1, 1]} : vector<2x128xf32> to vector<2x32xf32>
    %60 = vector.extract_strided_slice %55 {offsets = [0, 96], sizes = [2, 32], strides = [1, 1]} : vector<2x128xf32> to vector<2x32xf32>
    %61 = arith.mulf %58, %47 : vector<2x32xf32>
    %62 = arith.mulf %57, %59 : vector<2x32xf32>
    %63 = arith.addf %61, %62 : vector<2x32xf32>
    %64 = math.tanh %63 : vector<2x32xf32>
    %65 = arith.mulf %60, %64 : vector<2x32xf32>
    %66 = vector.extract_strided_slice %44 {offsets = [2, 0], sizes = [2, 128], strides = [1, 1]} : vector<16x128xf32> to vector<2x128xf32>
    %cst_26 = arith.constant dense<0.000000e+00> : vector<2x128xf32>
    %67 = tpu.matmul %65, %45, %cst_26 {dimension_numbers = #tpu.dot_dimension_numbers<[1], [0], [0], [1], [0, 0, 1, 1], [], []>} : vector<2x32xf32>, vector<32x128xf32>, vector<2x128xf32> -> vector<2x128xf32>
    %68 = arith.addf %66, %67 : vector<2x128xf32>
    %69 = arith.negf %68 : vector<2x128xf32>
    %70 = math.exp %69 : vector<2x128xf32>
    %cst_27 = arith.constant 1.000000e+00 : f32
    %71 = vector.broadcast %cst_27 : f32 to vector<2x128xf32>
    %72 = arith.addf %71, %70 : vector<2x128xf32>
    %73 = arith.divf %71, %72 : vector<2x128xf32>
    %74 = math.tanh %68 : vector<2x128xf32>
    %75 = vector.extract_strided_slice %73 {offsets = [0, 0], sizes = [2, 32], strides = [1, 1]} : vector<2x128xf32> to vector<2x32xf32>
    %76 = vector.extract_strided_slice %73 {offsets = [0, 32], sizes = [2, 32], strides = [1, 1]} : vector<2x128xf32> to vector<2x32xf32>
    %77 = vector.extract_strided_slice %74 {offsets = [0, 64], sizes = [2, 32], strides = [1, 1]} : vector<2x128xf32> to vector<2x32xf32>
    %78 = vector.extract_strided_slice %73 {offsets = [0, 96], sizes = [2, 32], strides = [1, 1]} : vector<2x128xf32> to vector<2x32xf32>
    %79 = arith.mulf %76, %63 : vector<2x32xf32>
    %80 = arith.mulf %75, %77 : vector<2x32xf32>
    %81 = arith.addf %79, %80 : vector<2x32xf32>
    %82 = math.tanh %81 : vector<2x32xf32>
    %83 = arith.mulf %78, %82 : vector<2x32xf32>
    %84 = vector.extract_strided_slice %44 {offsets = [4, 0], sizes = [2, 128], strides = [1, 1]} : vector<16x128xf32> to vector<2x128xf32>
    %cst_28 = arith.constant dense<0.000000e+00> : vector<2x128xf32>
    %85 = tpu.matmul %83, %45, %cst_28 {dimension_numbers = #tpu.dot_dimension_numbers<[1], [0], [0], [1], [0, 0, 1, 1], [], []>} : vector<2x32xf32>, vector<32x128xf32>, vector<2x128xf32> -> vector<2x128xf32>
    %86 = arith.addf %84, %85 : vector<2x128xf32>
    %87 = arith.negf %86 : vector<2x128xf32>
    %88 = math.exp %87 : vector<2x128xf32>
    %cst_29 = arith.constant 1.000000e+00 : f32
    %89 = vector.broadcast %cst_29 : f32 to vector<2x128xf32>
    %90 = arith.addf %89, %88 : vector<2x128xf32>
    %91 = arith.divf %89, %90 : vector<2x128xf32>
    %92 = math.tanh %86 : vector<2x128xf32>
    %93 = vector.extract_strided_slice %91 {offsets = [0, 0], sizes = [2, 32], strides = [1, 1]} : vector<2x128xf32> to vector<2x32xf32>
    %94 = vector.extract_strided_slice %91 {offsets = [0, 32], sizes = [2, 32], strides = [1, 1]} : vector<2x128xf32> to vector<2x32xf32>
    %95 = vector.extract_strided_slice %92 {offsets = [0, 64], sizes = [2, 32], strides = [1, 1]} : vector<2x128xf32> to vector<2x32xf32>
    %96 = vector.extract_strided_slice %91 {offsets = [0, 96], sizes = [2, 32], strides = [1, 1]} : vector<2x128xf32> to vector<2x32xf32>
    %97 = arith.mulf %94, %81 : vector<2x32xf32>
    %98 = arith.mulf %93, %95 : vector<2x32xf32>
    %99 = arith.addf %97, %98 : vector<2x32xf32>
    %100 = math.tanh %99 : vector<2x32xf32>
    %101 = arith.mulf %96, %100 : vector<2x32xf32>
    %102 = vector.extract_strided_slice %44 {offsets = [6, 0], sizes = [2, 128], strides = [1, 1]} : vector<16x128xf32> to vector<2x128xf32>
    %cst_30 = arith.constant dense<0.000000e+00> : vector<2x128xf32>
    %103 = tpu.matmul %101, %45, %cst_30 {dimension_numbers = #tpu.dot_dimension_numbers<[1], [0], [0], [1], [0, 0, 1, 1], [], []>} : vector<2x32xf32>, vector<32x128xf32>, vector<2x128xf32> -> vector<2x128xf32>
    %104 = arith.addf %102, %103 : vector<2x128xf32>
    %105 = arith.negf %104 : vector<2x128xf32>
    %106 = math.exp %105 : vector<2x128xf32>
    %cst_31 = arith.constant 1.000000e+00 : f32
    %107 = vector.broadcast %cst_31 : f32 to vector<2x128xf32>
    %108 = arith.addf %107, %106 : vector<2x128xf32>
    %109 = arith.divf %107, %108 : vector<2x128xf32>
    %110 = math.tanh %104 : vector<2x128xf32>
    %111 = vector.extract_strided_slice %109 {offsets = [0, 0], sizes = [2, 32], strides = [1, 1]} : vector<2x128xf32> to vector<2x32xf32>
    %112 = vector.extract_strided_slice %109 {offsets = [0, 32], sizes = [2, 32], strides = [1, 1]} : vector<2x128xf32> to vector<2x32xf32>
    %113 = vector.extract_strided_slice %110 {offsets = [0, 64], sizes = [2, 32], strides = [1, 1]} : vector<2x128xf32> to vector<2x32xf32>
    %114 = vector.extract_strided_slice %109 {offsets = [0, 96], sizes = [2, 32], strides = [1, 1]} : vector<2x128xf32> to vector<2x32xf32>
    %115 = arith.mulf %112, %99 : vector<2x32xf32>
    %116 = arith.mulf %111, %113 : vector<2x32xf32>
    %117 = arith.addf %115, %116 : vector<2x32xf32>
    %118 = math.tanh %117 : vector<2x32xf32>
    %119 = arith.mulf %114, %118 : vector<2x32xf32>
    %120 = vector.extract_strided_slice %44 {offsets = [8, 0], sizes = [2, 128], strides = [1, 1]} : vector<16x128xf32> to vector<2x128xf32>
    %cst_32 = arith.constant dense<0.000000e+00> : vector<2x128xf32>
    %121 = tpu.matmul %119, %45, %cst_32 {dimension_numbers = #tpu.dot_dimension_numbers<[1], [0], [0], [1], [0, 0, 1, 1], [], []>} : vector<2x32xf32>, vector<32x128xf32>, vector<2x128xf32> -> vector<2x128xf32>
    %122 = arith.addf %120, %121 : vector<2x128xf32>
    %123 = arith.negf %122 : vector<2x128xf32>
    %124 = math.exp %123 : vector<2x128xf32>
    %cst_33 = arith.constant 1.000000e+00 : f32
    %125 = vector.broadcast %cst_33 : f32 to vector<2x128xf32>
    %126 = arith.addf %125, %124 : vector<2x128xf32>
    %127 = arith.divf %125, %126 : vector<2x128xf32>
    %128 = math.tanh %122 : vector<2x128xf32>
    %129 = vector.extract_strided_slice %127 {offsets = [0, 0], sizes = [2, 32], strides = [1, 1]} : vector<2x128xf32> to vector<2x32xf32>
    %130 = vector.extract_strided_slice %127 {offsets = [0, 32], sizes = [2, 32], strides = [1, 1]} : vector<2x128xf32> to vector<2x32xf32>
    %131 = vector.extract_strided_slice %128 {offsets = [0, 64], sizes = [2, 32], strides = [1, 1]} : vector<2x128xf32> to vector<2x32xf32>
    %132 = vector.extract_strided_slice %127 {offsets = [0, 96], sizes = [2, 32], strides = [1, 1]} : vector<2x128xf32> to vector<2x32xf32>
    %133 = arith.mulf %130, %117 : vector<2x32xf32>
    %134 = arith.mulf %129, %131 : vector<2x32xf32>
    %135 = arith.addf %133, %134 : vector<2x32xf32>
    %136 = math.tanh %135 : vector<2x32xf32>
    %137 = arith.mulf %132, %136 : vector<2x32xf32>
    %138 = vector.extract_strided_slice %44 {offsets = [10, 0], sizes = [2, 128], strides = [1, 1]} : vector<16x128xf32> to vector<2x128xf32>
    %cst_34 = arith.constant dense<0.000000e+00> : vector<2x128xf32>
    %139 = tpu.matmul %137, %45, %cst_34 {dimension_numbers = #tpu.dot_dimension_numbers<[1], [0], [0], [1], [0, 0, 1, 1], [], []>} : vector<2x32xf32>, vector<32x128xf32>, vector<2x128xf32> -> vector<2x128xf32>
    %140 = arith.addf %138, %139 : vector<2x128xf32>
    %141 = arith.negf %140 : vector<2x128xf32>
    %142 = math.exp %141 : vector<2x128xf32>
    %cst_35 = arith.constant 1.000000e+00 : f32
    %143 = vector.broadcast %cst_35 : f32 to vector<2x128xf32>
    %144 = arith.addf %143, %142 : vector<2x128xf32>
    %145 = arith.divf %143, %144 : vector<2x128xf32>
    %146 = math.tanh %140 : vector<2x128xf32>
    %147 = vector.extract_strided_slice %145 {offsets = [0, 0], sizes = [2, 32], strides = [1, 1]} : vector<2x128xf32> to vector<2x32xf32>
    %148 = vector.extract_strided_slice %145 {offsets = [0, 32], sizes = [2, 32], strides = [1, 1]} : vector<2x128xf32> to vector<2x32xf32>
    %149 = vector.extract_strided_slice %146 {offsets = [0, 64], sizes = [2, 32], strides = [1, 1]} : vector<2x128xf32> to vector<2x32xf32>
    %150 = vector.extract_strided_slice %145 {offsets = [0, 96], sizes = [2, 32], strides = [1, 1]} : vector<2x128xf32> to vector<2x32xf32>
    %151 = arith.mulf %148, %135 : vector<2x32xf32>
    %152 = arith.mulf %147, %149 : vector<2x32xf32>
    %153 = arith.addf %151, %152 : vector<2x32xf32>
    %154 = math.tanh %153 : vector<2x32xf32>
    %155 = arith.mulf %150, %154 : vector<2x32xf32>
    %156 = vector.extract_strided_slice %44 {offsets = [12, 0], sizes = [2, 128], strides = [1, 1]} : vector<16x128xf32> to vector<2x128xf32>
    %cst_36 = arith.constant dense<0.000000e+00> : vector<2x128xf32>
    %157 = tpu.matmul %155, %45, %cst_36 {dimension_numbers = #tpu.dot_dimension_numbers<[1], [0], [0], [1], [0, 0, 1, 1], [], []>} : vector<2x32xf32>, vector<32x128xf32>, vector<2x128xf32> -> vector<2x128xf32>
    %158 = arith.addf %156, %157 : vector<2x128xf32>
    %159 = arith.negf %158 : vector<2x128xf32>
    %160 = math.exp %159 : vector<2x128xf32>
    %cst_37 = arith.constant 1.000000e+00 : f32
    %161 = vector.broadcast %cst_37 : f32 to vector<2x128xf32>
    %162 = arith.addf %161, %160 : vector<2x128xf32>
    %163 = arith.divf %161, %162 : vector<2x128xf32>
    %164 = math.tanh %158 : vector<2x128xf32>
    %165 = vector.extract_strided_slice %163 {offsets = [0, 0], sizes = [2, 32], strides = [1, 1]} : vector<2x128xf32> to vector<2x32xf32>
    %166 = vector.extract_strided_slice %163 {offsets = [0, 32], sizes = [2, 32], strides = [1, 1]} : vector<2x128xf32> to vector<2x32xf32>
    %167 = vector.extract_strided_slice %164 {offsets = [0, 64], sizes = [2, 32], strides = [1, 1]} : vector<2x128xf32> to vector<2x32xf32>
    %168 = vector.extract_strided_slice %163 {offsets = [0, 96], sizes = [2, 32], strides = [1, 1]} : vector<2x128xf32> to vector<2x32xf32>
    %169 = arith.mulf %166, %153 : vector<2x32xf32>
    %170 = arith.mulf %165, %167 : vector<2x32xf32>
    %171 = arith.addf %169, %170 : vector<2x32xf32>
    %172 = math.tanh %171 : vector<2x32xf32>
    %173 = arith.mulf %168, %172 : vector<2x32xf32>
    %174 = vector.extract_strided_slice %44 {offsets = [14, 0], sizes = [2, 128], strides = [1, 1]} : vector<16x128xf32> to vector<2x128xf32>
    %cst_38 = arith.constant dense<0.000000e+00> : vector<2x128xf32>
    %175 = tpu.matmul %173, %45, %cst_38 {dimension_numbers = #tpu.dot_dimension_numbers<[1], [0], [0], [1], [0, 0, 1, 1], [], []>} : vector<2x32xf32>, vector<32x128xf32>, vector<2x128xf32> -> vector<2x128xf32>
    %176 = arith.addf %174, %175 : vector<2x128xf32>
    %177 = arith.negf %176 : vector<2x128xf32>
    %178 = math.exp %177 : vector<2x128xf32>
    %cst_39 = arith.constant 1.000000e+00 : f32
    %179 = vector.broadcast %cst_39 : f32 to vector<2x128xf32>
    %180 = arith.addf %179, %178 : vector<2x128xf32>
    %181 = arith.divf %179, %180 : vector<2x128xf32>
    %182 = math.tanh %176 : vector<2x128xf32>
    %183 = vector.extract_strided_slice %181 {offsets = [0, 0], sizes = [2, 32], strides = [1, 1]} : vector<2x128xf32> to vector<2x32xf32>
    %184 = vector.extract_strided_slice %181 {offsets = [0, 32], sizes = [2, 32], strides = [1, 1]} : vector<2x128xf32> to vector<2x32xf32>
    %185 = vector.extract_strided_slice %182 {offsets = [0, 64], sizes = [2, 32], strides = [1, 1]} : vector<2x128xf32> to vector<2x32xf32>
    %186 = vector.extract_strided_slice %181 {offsets = [0, 96], sizes = [2, 32], strides = [1, 1]} : vector<2x128xf32> to vector<2x32xf32>
    %187 = arith.mulf %184, %171 : vector<2x32xf32>
    %188 = arith.mulf %183, %185 : vector<2x32xf32>
    %189 = arith.addf %187, %188 : vector<2x32xf32>
    %190 = math.tanh %189 : vector<2x32xf32>
    %191 = arith.mulf %186, %190 : vector<2x32xf32>
    %c0_40 = arith.constant 0 : index
    %c0_41 = arith.constant 0 : index
    %192 = vector.load %arg11[%c0_40, %c0_41] : memref<32x128xf32, #tpu.memory_space<vmem>>, vector<32x128xf32>
    %cst_42 = arith.constant dense<0.000000e+00> : vector<2x128xf32>
    %193 = tpu.matmul %191, %192, %cst_42 {dimension_numbers = #tpu.dot_dimension_numbers<[1], [0], [0], [1], [0, 0, 1, 1], [], []>} : vector<2x32xf32>, vector<32x128xf32>, vector<2x128xf32> -> vector<2x128xf32>
    %c0_43 = arith.constant 0 : index
    %c0_44 = arith.constant 0 : index
    %194 = vector.load %arg12[%c0_43, %c0_44] : memref<1x128xf32, #tpu.memory_space<vmem>>, vector<1x128xf32>
    %195 = vector.broadcast %194 : vector<1x128xf32> to vector<2x128xf32>
    %196 = arith.addf %193, %195 : vector<2x128xf32>
    %c0_45 = arith.constant 0 : index
    %c0_46 = arith.constant 0 : index
    %197 = vector.load %arg13[%c0_45, %c0_46] : memref<2x128xf32, #tpu.memory_space<vmem>>, vector<2x128xf32>
    tpu.vector_store %arg13[%c0_45, %c0_46], %196 {strides = array<i32>} : memref<2x128xf32, #tpu.memory_space<vmem>>, vector<2x128xf32>,
    return
  }
  func.func @transform_0(%arg0: i32) -> (i32, i32) {
    %c0_i32 = arith.constant 0 : i32
    %c0_i32_0 = arith.constant 0 : i32
    %c0_i32_1 = arith.constant 0 : i32
    return %c0_i32, %c0_i32_0 : i32, i32
  }
  func.func @transform_1(%arg0: i32) -> (i32, i32) {
    %c0_i32 = arith.constant 0 : i32
    %c0_i32_0 = arith.constant 0 : i32
    %c0_i32_1 = arith.constant 0 : i32
    return %c0_i32, %c0_i32_0 : i32, i32
  }
  func.func @transform_2(%arg0: i32) -> (i32, i32) {
    %c0_i32 = arith.constant 0 : i32
    %c0_i32_0 = arith.constant 0 : i32
    %c0_i32_1 = arith.constant 0 : i32
    return %c0_i32, %c0_i32_0 : i32, i32
  }
  func.func @transform_3(%arg0: i32) -> (i32, i32) {
    %c0_i32 = arith.constant 0 : i32
    %c0_i32_0 = arith.constant 0 : i32
    %c0_i32_1 = arith.constant 0 : i32
    return %c0_i32, %c0_i32_0 : i32, i32
  }
  func.func @transform_4(%arg0: i32) -> (i32, i32) {
    %c0_i32 = arith.constant 0 : i32
    %c0_i32_0 = arith.constant 0 : i32
    %c0_i32_1 = arith.constant 0 : i32
    return %c0_i32, %c0_i32_0 : i32, i32
  }
  func.func @transform_5(%arg0: i32) -> (i32, i32) {
    %c0_i32 = arith.constant 0 : i32
    %c0_i32_0 = arith.constant 0 : i32
    %c0_i32_1 = arith.constant 0 : i32
    return %c0_i32, %c0_i32_0 : i32, i32
  }
  func.func @transform_6(%arg0: i32) -> (i32, i32) {
    %c0_i32 = arith.constant 0 : i32
    %c0_i32_0 = arith.constant 0 : i32
    %c0_i32_1 = arith.constant 0 : i32
    return %c0_i32, %c0_i32_0 : i32, i32
  }
  func.func @transform_7(%arg0: i32) -> (i32, i32) {
    %c0_i32 = arith.constant 0 : i32
    %c0_i32_0 = arith.constant 0 : i32
    %c0_i32_1 = arith.constant 0 : i32
    return %c0_i32, %c0_i32_0 : i32, i32
  }
  func.func @transform_8(%arg0: i32) -> (i32, i32) {
    %c0_i32 = arith.constant 0 : i32
    %c0_i32_0 = arith.constant 0 : i32
    %c0_i32_1 = arith.constant 0 : i32
    return %c0_i32, %c0_i32_0 : i32, i32
  }
  func.func @transform_9(%arg0: i32) -> (i32, i32) {
    %c0_i32 = arith.constant 0 : i32
    %c0_i32_0 = arith.constant 0 : i32
    %c0_i32_1 = arith.constant 0 : i32
    return %c0_i32, %c0_i32_0 : i32, i32
  }
  func.func @transform_10(%arg0: i32) -> (i32, i32) {
    %c0_i32 = arith.constant 0 : i32
    %c0_i32_0 = arith.constant 0 : i32
    %c0_i32_1 = arith.constant 0 : i32
    return %c0_i32, %c0_i32_0 : i32, i32
  }
  func.func @transform_11(%arg0: i32) -> (i32, i32) {
    %c0_i32 = arith.constant 0 : i32
    %c0_i32_0 = arith.constant 0 : i32
    %c0_i32_1 = arith.constant 0 : i32
    return %c0_i32, %c0_i32_0 : i32, i32
  }
  func.func @transform_12(%arg0: i32) -> (i32, i32) {
    %c0_i32 = arith.constant 0 : i32
    %c0_i32_0 = arith.constant 0 : i32
    %c0_i32_1 = arith.constant 0 : i32
    return %c0_i32, %c0_i32_0 : i32, i32
  }
}

</mosaic_0001>

<bundles_post_ra>
// kernel: tile.14
= control target key start
LH: loop header
LB: loop body
LE: loop exit
PB: predicated region body
PF: predicated region fallthrough
CT: control target
= control target key end

     0   :  { %s28_s0 = inlined_call_operand.vmem [shape: f32[16], index: 0, kind: input, shape index: {}]   ;;  %s29_s1 = inlined_call_operand.vmem [shape: f32[16,16], index: 1, kind: output, shape index: {}]  }
   0x1   :  { %v4_v0 = vld [vmem:[%s28_s0] ss:$0 sm:$0xff] }
   0x2   :  { %5 = vst [vmem:[%s29_s1] sm:$0xff] %v4_v0 }
   0x3   :  { %8 = vst [vmem:[%s29_s1 + $0x8] sm:$0xff] %v4_v0 }

// kernel: tile.15
= control target key start
LH: loop header
LB: loop body
LE: loop exit
PB: predicated region body
PF: predicated region fallthrough
CT: control target
= control target key end

     0   :  { %s7_s6 = smov 3  ;;  %s21_s9 = smov 3  ;;  %vm4_vm0 = vcmask 130048   ;;  %vm11_vm1 = vcmask 1048448   ;;  %vm18_vm2 = vcmask 917248   ;;  %vm25_vm3 = vcmask 786048   ;;  %s129_s0 = inlined_call_operand.vmem [shape: f32[16,16], index: 0, kind: input, shape index: {}]   ;;  %s130_s1 = inlined_call_operand.vmem [shape: f32[1,256], index: 1, kind: output, shape index: {}]  }
   0x1   :  { %v67_v0 = vld [vmem:[%s129_s0 + $0x7] ss:$8 sm:%s7_s6]   ;;  %s82_s10 = smov 112   ;;  %v69_v1 = vld [vmem:[%s129_s0 + $0x5] ss:$8 sm:%s21_s9]   ;;  %s83_s13 = smov 80  }
   0x2   :  { %9 = vrot.lane.b32.xlu0 %v67_v0, %s82_s10  ;;  %23 = vrot.lane.b32.xlu1 %v69_v1, %s83_s13  ;;  %s14_s14 = smov 3  ;;  %s28_s15 = smov 3  ;;  %vm32_vm4 = vcmask 654848   ;;  %vm39_vm5 = vcmask 523648   ;;  %vm46_vm6 = vcmask 392448   ;;  %vm53_vm7 = vcmask 261248  }
   0x3   :  { %s35_s16 = smov 3  ;;  %v68_v3 = vld [vmem:[%s129_s0 + $0x6] ss:$8 sm:%s14_s14]   ;;  %s84_s21 = smov 48   ;;  %v70_v4 = vld [vmem:[%s129_s0 + $0x4] ss:$8 sm:%s28_s15]  }
   0x4   :  { %v71_v2 = vld [vmem:[%s129_s0 + $0x3] ss:$8 sm:%s35_s16]   ;;  %s42_s24 = smov 3  ;;  %s85_s25 = smov 96  }
   0x5   :  { %37 = vrot.lane.b32.xlu2 %v71_v2, %s84_s21  ;;  %s86_s26 = smov 64   ;;  %s49_s27 = smov 3  ;;  %v72_v5 = vld [vmem:[%s129_s0 + $0x2] ss:$8 sm:%s42_s24]  }
   0x6   :  { %v73_v6 = vld [vmem:[%s129_s0 + $0x1] ss:$8 sm:%s49_s27]   ;;  %s87_s3 = smov 32   ;;  %s88_s4 = smov 16  }
   0x7   :  { %s2_s5 = smov 3 }
   0x8   :  { %v3_v7 = vld [vmem:[%s129_s0] ss:$8 sm:%s2_s5]  }
   0x9   :  { %5 = vst.msk [vmem:[#allocation0] ss:$8 sm:$0x3] %vm4_vm0, %v3_v7  }
   0xa   :  { %16 = vrot.lane.b32.xlu0 %v68_v3, %s85_s25  ;;  %30 = vrot.lane.b32.xlu1 %v70_v4, %s86_s26 }
   0xd   :  { %44 = vrot.lane.b32.xlu2 %v72_v5, %s87_s3 }
  0x12   :  { %51 = vrot.lane.b32.xlu0 %v73_v6, %s88_s4 }
  0x5f   :  { %v38_v8 = vpop.permute.xlu2 %37  }
  0x67   :  { %v45_v9 = vpop.permute.xlu2 %44  }
  0x74   :  { %v10_v10 = vpop.permute.xlu0 %9   ;;  %v24_v11 = vpop.permute.xlu1 %23  }
  0x75   :  { %12 = vst.msk [vmem:[#allocation0] ss:$8 sm:$0x3] %vm11_vm1, %v10_v10  }
  0x7c   :  { %v17_v12 = vpop.permute.xlu0 %16   ;;  %v31_v13 = vpop.permute.xlu1 %30  }
  0x7d   :  { %19 = vst.msk [vmem:[#allocation0] ss:$8 sm:$0x3] %vm18_vm2, %v17_v12  }
  0x7e   :  { %26 = vst.msk [vmem:[#allocation0] ss:$8 sm:$0x3] %vm25_vm3, %v24_v11  }
  0x7f   :  { %33 = vst.msk [vmem:[#allocation0] ss:$8 sm:$0x3] %vm32_vm4, %v31_v13  }
  0x80   :  { %40 = vst.msk [vmem:[#allocation0] ss:$8 sm:$0x3] %vm39_vm5, %v38_v8  }
  0x81   :  { %47 = vst.msk [vmem:[#allocation0] ss:$8 sm:$0x3] %vm46_vm6, %v45_v9  }
  0x84   :  { %v52_v14 = vpop.permute.xlu0 %51  }
  0x85   :  { %54 = vst.msk [vmem:[#allocation0] ss:$8 sm:$0x3] %vm53_vm7, %v52_v14  }
  0x8c   :  { %v57_v15 = vld [vmem:[#allocation0] sm:$0x1]  ;;  %v62_v16 = vld [vmem:[#allocation0 + $0x8] sm:$0x1] }
  0x8d   :  { %60 = vst [vmem:[%s130_s1] sm:$0x1] %v57_v15 }
  0x8e   :  { %74 = vst [vmem:[%s130_s1 + $0x1] sm:$0x1] %v62_v16 }

// kernel: tile.19
= control target key start
LH: loop header
LB: loop body
LE: loop exit
PB: predicated region body
PF: predicated region fallthrough
CT: control target
= control target key end

     0   :  { %s22_s0 = inlined_call_operand.vmem [shape: f32[32], index: 0, kind: input, shape index: {}]   ;;  %s23_s1 = inlined_call_operand.vmem [shape: f32[4,32], index: 1, kind: output, shape index: {}]  }
   0x1   :  { %v4_v0 = vld [vmem:[%s22_s0] ss:$0 sm:$0xff] }
   0x2   :  { %5 = vst [vmem:[%s23_s1] sm:$0xf] %v4_v0 }

// kernel: tile.20
= control target key start
LH: loop header
LB: loop body
LE: loop exit
PB: predicated region body
PF: predicated region fallthrough
CT: control target
= control target key end

     0   :  { %s37_s8 = smov 32   ;;  %s38_s9 = smov 64   ;;  %vm7_vm0 = vcmask 261120   ;;  %vm13_vm1 = vcmask 1048320   ;;  %vm19_vm2 = vcmask 785920   ;;  %vm25_vm3 = vcmask 523520   ;;  %s55_s0 = inlined_call_operand.vmem [shape: f32[4,32], index: 0, kind: input, shape index: {}]   ;;  %s56_s1 = inlined_call_operand.vmem [shape: f32[1,128], index: 1, kind: output, shape index: {}]  }
   0x1   :  { %v4_v0 = vld [vmem:[%s55_s0] sm:$0xf]  ;;  %s36_s0 = smov 96  }
   0x2   :  { %5 = vst [vmem:[#allocation1] sm:$0xf] %v4_v0 }
   0x9   :  { %v10_v1 = vld [vmem:[#allocation1 + $0x3] sm:$0x1]   ;;  %v22_v2 = vld [vmem:[#allocation1 + $0x1] sm:$0x1]   ;;  %v16_v3 = vld [vmem:[#allocation1 + $0x2] sm:$0x1]  }
   0xa   :  { %11 = vrot.lane.b32.xlu0 %v10_v1, %s36_s0  ;;  %23 = vrot.lane.b32.xlu1 %v22_v2, %s37_s8  ;;  %v6_v4 = vld [vmem:[#allocation1] sm:$0x1]  }
   0xb   :  { %8 = vst.msk [vmem:[#allocation0] sm:$0x1] %vm7_vm0, %v6_v4  }
  0x12   :  { %17 = vrot.lane.b32.xlu0 %v16_v3, %s38_s9 }
  0x7c   :  { %v12_v5 = vpop.permute.xlu0 %11   ;;  %v24_v6 = vpop.permute.xlu1 %23  }
  0x7d   :  { %14 = vst.msk [vmem:[#allocation0] sm:$0x1] %vm13_vm1, %v12_v5  }
  0x84   :  { %v18_v7 = vpop.permute.xlu0 %17  }
  0x85   :  { %20 = vst.msk [vmem:[#allocation0] sm:$0x1] %vm19_vm2, %v18_v7  }
  0x86   :  { %26 = vst.msk [vmem:[#allocation0] sm:$0x1] %vm25_vm3, %v24_v6  }
  0x8d   :  { %v29_v8 = vld [vmem:[#allocation0] sm:$0x1] }
  0x8e   :  { %32 = vst [vmem:[%s56_s1] sm:$0x1] %v29_v8 }

// kernel: forward.1
= control target key start
LH: loop header
LB: loop body
LE: loop exit
PB: predicated region body
PF: predicated region fallthrough
CT: control target
= control target key end

     0   :  { %s4202_s0 = inlined_call_operand.vmem [shape: bf16[16,128], index: 0, kind: input, shape index: {}]   ;;  %s4203_s1 = inlined_call_operand.vmem [shape: bf16[128,1024], index: 1, kind: input, shape index: {}]   ;;  %s4204_s2 = inlined_call_operand.vmem [shape: f32[1,256], index: 2, kind: input, shape index: {}]   ;;  %s4205_s3 = inlined_call_operand.vmem [shape: bf16[256,512], index: 3, kind: input, shape index: {}]   ;;  %s4206_s4 = inlined_call_operand.vmem [shape: f32[1,128], index: 4, kind: input, shape index: {}]   ;;  %s4207_s5 = inlined_call_operand.vmem [shape: bf16[128,512], index: 5, kind: input, shape index: {}]   ;;  %s4208_s6 = inlined_call_operand.vmem [shape: f32[1,128], index: 6, kind: input, shape index: {}]   ;;  %s4209_s7 = inlined_call_operand.vmem [shape: bf16[128,128], index: 7, kind: input, shape index: {}]   ;;  %s4210_s8 = inlined_call_operand.vmem [shape: f32[1,128], index: 8, kind: input, shape index: {}]   ;;  %s4211_s9 = inlined_call_operand.vmem [shape: f32[32,128], index: 9, kind: input, shape index: {}]   ;;  %s4212_s10 = inlined_call_operand.vmem [shape: f32[32,128], index: 10, kind: input, shape index: {}]   ;;  %s4213_s11 = inlined_call_operand.vmem [shape: f32[1,128], index: 11, kind: input, shape index: {}]   ;;  %s4214_s12 = inlined_call_operand.hbm [shape: f32[2,128], index: 12, kind: output, shape index: {}]  }
   0x1   :  { %v2254_v0 = vld [vmem:[%s4203_s1 + $0x1c0] sm:$0xf]  ;;  %v2773_v2 = vld [vmem:[%s4203_s1 + $0x1c4] sm:$0xf]  ;;  %v2262_v5 = vld [vmem:[%s4203_s1 + $0x1c8] sm:$0xf] }
   0x2   :  { %v2777_v1 = vld [vmem:[%s4203_s1 + $0x1dc] sm:$0xf0]  ;;  %v2256_v4 = vld [vmem:[%s4203_s1 + $0x1e0] sm:$0xf0]  ;;  %v2778_v6 = vld [vmem:[%s4203_s1 + $0x1e4] sm:$0xf0] }
   0x3   :  { %v2255_v3 = vor.u32 %v2777_v1, %v2254_v0  ;;  %v2259_v7 = vor.u32 %v2773_v2, %v2256_v4  ;;  %v2263_v8 = vor.u32 %v2778_v6, %v2262_v5  ;;  %v2774_v9 = vld [vmem:[%s4203_s1 + $0x1cc] sm:$0xf]  ;;  %v2222_v11 = vld [vmem:[%s4203_s1 + $0x180] sm:$0xf]  ;;  %v2765_v14 = vld [vmem:[%s4203_s1 + $0x184] sm:$0xf] }
   0x4   :  { %v2264_v10 = vld [vmem:[%s4203_s1 + $0x1e8] sm:$0xf0]  ;;  %v2769_v13 = vld [vmem:[%s4203_s1 + $0x19c] sm:$0xf0]  ;;  %v2224_v15 = vld [vmem:[%s4203_s1 + $0x1a0] sm:$0xf0] }
   0x5   :  { %434 = vmatpush.bf16.msra.mxu0 %v2255_v3  ;;  %v2267_v12 = vor.u32 %v2774_v9, %v2264_v10  ;;  %448 = vmatpush.bf16.msra.mxu1 %v2259_v7  ;;  %v2223_v16 = vor.u32 %v2769_v13, %v2222_v11  ;;  %v2227_v17 = vor.u32 %v2765_v14, %v2224_v15  ;;  %v2230_v18 = vld [vmem:[%s4203_s1 + $0x188] sm:$0xf]  ;;  %v2766_v20 = vld [vmem:[%s4203_s1 + $0x18c] sm:$0xf]  ;;  %v2190_v23 = vld [vmem:[%s4203_s1 + $0x140] sm:$0xf] }
   0x6   :  { %462 = vmatpush.bf16.msra.mxu2 %v2263_v8  ;;  %v2770_v19 = vld [vmem:[%s4203_s1 + $0x1a4] sm:$0xf0]  ;;  %v2232_v22 = vld [vmem:[%s4203_s1 + $0x1a8] sm:$0xf0]  ;;  %v2761_v24 = vld [vmem:[%s4203_s1 + $0x15c] sm:$0xf0] }
   0x7   :  { %476 = vmatpush.bf16.msra.mxu3 %v2267_v12  ;;  %v2231_v21 = vor.u32 %v2770_v19, %v2230_v18  ;;  %v2235_v25 = vor.u32 %v2766_v20, %v2232_v22  ;;  %v2757_v26 = vld [vmem:[%s4203_s1 + $0x144] sm:$0xf]  ;;  %v2198_v28 = vld [vmem:[%s4203_s1 + $0x148] sm:$0xf]  ;;  %v2191_v29 = vor.u32 %v2761_v24, %v2190_v23  ;;  %v2758_v31 = vld [vmem:[%s4203_s1 + $0x14c] sm:$0xf] }
   0x8   :  { %v2192_v27 = vld [vmem:[%s4203_s1 + $0x160] sm:$0xf0]  ;;  %v2762_v30 = vld [vmem:[%s4203_s1 + $0x164] sm:$0xf0]  ;;  %v2200_v32 = vld [vmem:[%s4203_s1 + $0x168] sm:$0xf0] }
   0x9   :  { %435 = vmatpush.bf16.msra.mxu0 %v2223_v16  ;;  %449 = vmatpush.bf16.msra.mxu1 %v2227_v17  ;;  %v2195_v33 = vor.u32 %v2757_v26, %v2192_v27  ;;  %v2199_v34 = vor.u32 %v2762_v30, %v2198_v28  ;;  %v2158_v35 = vld [vmem:[%s4203_s1 + $0x100] sm:$0xf]  ;;  %v2749_v37 = vld [vmem:[%s4203_s1 + $0x104] sm:$0xf]  ;;  %v2203_v38 = vor.u32 %v2758_v31, %v2200_v32  ;;  %v2166_v40 = vld [vmem:[%s4203_s1 + $0x108] sm:$0xf] }
   0xa   :  { %463 = vmatpush.bf16.msra.mxu2 %v2231_v21  ;;  %v2753_v36 = vld [vmem:[%s4203_s1 + $0x11c] sm:$0xf0]  ;;  %v2160_v39 = vld [vmem:[%s4203_s1 + $0x120] sm:$0xf0]  ;;  %v2754_v41 = vld [vmem:[%s4203_s1 + $0x124] sm:$0xf0] }
   0xb   :  { %477 = vmatpush.bf16.msra.mxu3 %v2235_v25  ;;  %v2750_v42 = vld [vmem:[%s4203_s1 + $0x10c] sm:$0xf]  ;;  %v2159_v44 = vor.u32 %v2753_v36, %v2158_v35  ;;  %v2163_v45 = vor.u32 %v2749_v37, %v2160_v39  ;;  %v2167_v46 = vor.u32 %v2754_v41, %v2166_v40  ;;  %v2126_v47 = vld [vmem:[%s4203_s1 + $0xc0] sm:$0xf]  ;;  %v2741_v49 = vld [vmem:[%s4203_s1 + $0xc4] sm:$0xf] }
   0xc   :  { %v2168_v43 = vld [vmem:[%s4203_s1 + $0x128] sm:$0xf0]  ;;  %v2745_v48 = vld [vmem:[%s4203_s1 + $0xdc] sm:$0xf0]  ;;  %v2128_v51 = vld [vmem:[%s4203_s1 + $0xe0] sm:$0xf0] }
   0xd   :  { %436 = vmatpush.bf16.msra.mxu0 %v2191_v29  ;;  %450 = vmatpush.bf16.msra.mxu1 %v2195_v33  ;;  %v2171_v50 = vor.u32 %v2750_v42, %v2168_v43  ;;  %v2134_v52 = vld [vmem:[%s4203_s1 + $0xc8] sm:$0xf]  ;;  %v2742_v54 = vld [vmem:[%s4203_s1 + $0xcc] sm:$0xf]  ;;  %v2127_v56 = vor.u32 %v2745_v48, %v2126_v47  ;;  %v2131_v57 = vor.u32 %v2741_v49, %v2128_v51  ;;  %v2094_v59 = vld [vmem:[%s4203_s1 + $0x80] sm:$0xf] }
   0xe   :  { %464 = vmatpush.bf16.msra.mxu2 %v2199_v34  ;;  %v2746_v53 = vld [vmem:[%s4203_s1 + $0xe4] sm:$0xf0]  ;;  %v2136_v55 = vld [vmem:[%s4203_s1 + $0xe8] sm:$0xf0]  ;;  %v2737_v60 = vld [vmem:[%s4203_s1 + $0x9c] sm:$0xf0] }
   0xf   :  { %478 = vmatpush.bf16.msra.mxu3 %v2203_v38  ;;  %v2135_v58 = vor.u32 %v2746_v53, %v2134_v52  ;;  %v2733_v61 = vld [vmem:[%s4203_s1 + $0x84] sm:$0xf]  ;;  %v2139_v62 = vor.u32 %v2742_v54, %v2136_v55  ;;  %v2102_v0 = vld [vmem:[%s4203_s1 + $0x88] sm:$0xf]  ;;  %v2734_v2 = vld [vmem:[%s4203_s1 + $0x8c] sm:$0xf]  ;;  %v2095_v4 = vor.u32 %v2737_v60, %v2094_v59 }
  0x10   :  { %v2096_v63 = vld [vmem:[%s4203_s1 + $0xa0] sm:$0xf0]  ;;  %v2738_v1 = vld [vmem:[%s4203_s1 + $0xa4] sm:$0xf0]  ;;  %v2104_v3 = vld [vmem:[%s4203_s1 + $0xa8] sm:$0xf0] }
  0x11   :  { %437 = vmatpush.bf16.msra.mxu0 %v2159_v44  ;;  %451 = vmatpush.bf16.msra.mxu1 %v2163_v45  ;;  %v2099_v5 = vor.u32 %v2733_v61, %v2096_v63  ;;  %v2103_v6 = vor.u32 %v2738_v1, %v2102_v0  ;;  %v2062_v7 = vld [vmem:[%s4203_s1 + $0x40] sm:$0xf]  ;;  %v2725_v9 = vld [vmem:[%s4203_s1 + $0x44] sm:$0xf]  ;;  %v2107_v10 = vor.u32 %v2734_v2, %v2104_v3  ;;  %v2070_v12 = vld [vmem:[%s4203_s1 + $0x48] sm:$0xf] }
  0x12   :  { %465 = vmatpush.bf16.msra.mxu2 %v2167_v46  ;;  %v2729_v8 = vld [vmem:[%s4203_s1 + $0x5c] sm:$0xf0]  ;;  %v2064_v11 = vld [vmem:[%s4203_s1 + $0x60] sm:$0xf0]  ;;  %v2730_v13 = vld [vmem:[%s4203_s1 + $0x64] sm:$0xf0] }
  0x13   :  { %479 = vmatpush.bf16.msra.mxu3 %v2171_v50  ;;  %v2726_v14 = vld [vmem:[%s4203_s1 + $0x4c] sm:$0xf]  ;;  %v2063_v16 = vor.u32 %v2729_v8, %v2062_v7  ;;  %v2030_v17 = vld [vmem:[%s4203_s1] sm:$0xf]  ;;  %v2067_v19 = vor.u32 %v2725_v9, %v2064_v11  ;;  %v2071_v20 = vor.u32 %v2730_v13, %v2070_v12  ;;  %v2717_v21 = vld [vmem:[%s4203_s1 + $0x4] sm:$0xf] }
  0x14   :  { %v2072_v15 = vld [vmem:[%s4203_s1 + $0x68] sm:$0xf0]  ;;  %v2721_v18 = vld [vmem:[%s4203_s1 + $0x1c] sm:$0xf0]  ;;  %v2032_v22 = vld [vmem:[%s4203_s1 + $0x20] sm:$0xf0] }
  0x15   :  { %438 = vmatpush.bf16.msra.mxu0 %v2127_v56  ;;  %452 = vmatpush.bf16.msra.mxu1 %v2131_v57  ;;  %v2038_v23 = vld [vmem:[%s4203_s1 + $0x8] sm:$0xf]  ;;  %v2075_v24 = vor.u32 %v2726_v14, %v2072_v15  ;;  %v2718_v26 = vld [vmem:[%s4203_s1 + $0xc] sm:$0xf]  ;;  %v2270_v28 = vld [vmem:[%s4203_s1 + $0x1d0] sm:$0xf]  ;;  %v2031_v31 = vor.u32 %v2721_v18, %v2030_v17  ;;  %v2035_v35 = vor.u32 %v2717_v21, %v2032_v22 }
  0x16   :  { %466 = vmatpush.bf16.msra.mxu2 %v2135_v58  ;;  %v2722_v25 = vld [vmem:[%s4203_s1 + $0x24] sm:$0xf0]  ;;  %v2040_v27 = vld [vmem:[%s4203_s1 + $0x28] sm:$0xf0]  ;;  %v2779_v29 = vld [vmem:[%s4203_s1 + $0x1ec] sm:$0xf0] }
  0x17   :  { %480 = vmatpush.bf16.msra.mxu3 %v2139_v62  ;;  %v2775_v30 = vld [vmem:[%s4203_s1 + $0x1d4] sm:$0xf]  ;;  %v2278_v33 = vld [vmem:[%s4203_s1 + $0x1d8] sm:$0xf]  ;;  %v2039_v36 = vor.u32 %v2722_v25, %v2038_v23  ;;  %v2776_v37 = vld [vmem:[%s4203_s1 + $0x1dc] sm:$0xf]  ;;  %v2043_v39 = vor.u32 %v2718_v26, %v2040_v27  ;;  %v2271_v40 = vor.u32 %v2779_v29, %v2270_v28 }
  0x18   :  { %v2272_v32 = vld [vmem:[%s4203_s1 + $0x1f0] sm:$0xf0]  ;;  %v2780_v34 = vld [vmem:[%s4203_s1 + $0x1f4] sm:$0xf0]  ;;  %v2280_v38 = vld [vmem:[%s4203_s1 + $0x1f8] sm:$0xf0] }
  0x19   :  { %439 = vmatpush.bf16.msra.mxu0 %v2095_v4  ;;  %453 = vmatpush.bf16.msra.mxu1 %v2099_v5  ;;  %v2238_v41 = vld [vmem:[%s4203_s1 + $0x190] sm:$0xf]  ;;  %v2275_v42 = vor.u32 %v2775_v30, %v2272_v32  ;;  %v2279_v43 = vor.u32 %v2780_v34, %v2278_v33  ;;  %v2767_v45 = vld [vmem:[%s4203_s1 + $0x194] sm:$0xf]  ;;  %v2283_v47 = vor.u32 %v2776_v37, %v2280_v38  ;;  %v2246_v48 = vld [vmem:[%s4203_s1 + $0x198] sm:$0xf] }
  0x1a   :  { %467 = vmatpush.bf16.msra.mxu2 %v2103_v6  ;;  %v2771_v44 = vld [vmem:[%s4203_s1 + $0x1ac] sm:$0xf0]  ;;  %v2240_v46 = vld [vmem:[%s4203_s1 + $0x1b0] sm:$0xf0]  ;;  %v2772_v49 = vld [vmem:[%s4203_s1 + $0x1b4] sm:$0xf0] }
  0x1b   :  { %481 = vmatpush.bf16.msra.mxu3 %v2107_v10  ;;  %v3289_v50 = vld [vmem:[%s4202_s0] sm:$0xff]  ;;  %v2768_v51 = vld [vmem:[%s4203_s1 + $0x19c] sm:$0xf]  ;;  %v2239_v53 = vor.u32 %v2771_v44, %v2238_v41  ;;  %v2243_v54 = vor.u32 %v2767_v45, %v2240_v46  ;;  %v2247_v55 = vor.u32 %v2772_v49, %v2246_v48  ;;  %v2206_v56 = vld [vmem:[%s4203_s1 + $0x150] sm:$0xf] }
  0x1c   :  { %v2248_v52 = vld [vmem:[%s4203_s1 + $0x1b8] sm:$0xf0]  ;;  %v2763_v57 = vld [vmem:[%s4203_s1 + $0x16c] sm:$0xf0]  ;;  %v2759_v58 = vld [vmem:[%s4203_s1 + $0x154] sm:$0xf] }
  0x1d   :  { %440 = vmatpush.bf16.msra.mxu0 %v2063_v16  ;;  %454 = vmatpush.bf16.msra.mxu1 %v2067_v19  ;;  %v2251_v59 = vor.u32 %v2768_v51, %v2248_v52  ;;  %v2208_v60 = vld [vmem:[%s4203_s1 + $0x170] sm:$0xf0]  ;;  %v2214_v61 = vld [vmem:[%s4203_s1 + $0x158] sm:$0xf]  ;;  %v2760_v63 = vld [vmem:[%s4203_s1 + $0x15c] sm:$0xf]  ;;  %v2207_v1 = vor.u32 %v2763_v57, %v2206_v56 }
  0x1e   :  { %468 = vmatpush.bf16.msra.mxu2 %v2071_v20  ;;  %v2764_v62 = vld [vmem:[%s4203_s1 + $0x174] sm:$0xf0]  ;;  %v2216_v0 = vld [vmem:[%s4203_s1 + $0x178] sm:$0xf0]  ;;  %v2211_v2 = vor.u32 %v2759_v58, %v2208_v60  ;;  %v2174_v4 = vld [vmem:[%s4203_s1 + $0x110] sm:$0xf] }
  0x1f   :  { %482 = vmatpush.bf16.msra.mxu3 %v2075_v24  ;;  %v2215_v3 = vor.u32 %v2764_v62, %v2214_v61  ;;  %v2755_v5 = vld [vmem:[%s4203_s1 + $0x12c] sm:$0xf0]  ;;  %v2751_v6 = vld [vmem:[%s4203_s1 + $0x114] sm:$0xf]  ;;  %v2219_v7 = vor.u32 %v2760_v63, %v2216_v0  ;;  %v2182_v9 = vld [vmem:[%s4203_s1 + $0x118] sm:$0xf] }
  0x20   :  { %v2176_v8 = vld [vmem:[%s4203_s1 + $0x130] sm:$0xf0]  ;;  %v2756_v10 = vld [vmem:[%s4203_s1 + $0x134] sm:$0xf0]  ;;  %v2752_v11 = vld [vmem:[%s4203_s1 + $0x11c] sm:$0xf]  ;;  %v2175_v13 = vor.u32 %v2755_v5, %v2174_v4 }
  0x21   :  { %441 = vmatpush.bf16.msra.mxu0 %v2031_v31  ;;  %455 = vmatpush.bf16.msra.mxu1 %v2035_v35  ;;  %v2184_v12 = vld [vmem:[%s4203_s1 + $0x138] sm:$0xf0]  ;;  %v2142_v14 = vld [vmem:[%s4203_s1 + $0xd0] sm:$0xf]  ;;  %v2179_v15 = vor.u32 %v2751_v6, %v2176_v8  ;;  %v2183_v16 = vor.u32 %v2756_v10, %v2182_v9  ;;  %v2743_v18 = vld [vmem:[%s4203_s1 + $0xd4] sm:$0xf] }
  0x22   :  { %469 = vmatpush.bf16.msra.mxu2 %v2039_v36  ;;  %v2747_v17 = vld [vmem:[%s4203_s1 + $0xec] sm:$0xf0]  ;;  %v2144_v19 = vld [vmem:[%s4203_s1 + $0xf0] sm:$0xf0]  ;;  %v2187_v20 = vor.u32 %v2752_v11, %v2184_v12  ;;  %v2150_v21 = vld [vmem:[%s4203_s1 + $0xd8] sm:$0xf] }
  0x23   :  { %483 = vmatpush.bf16.msra.mxu3 %v2043_v39  ;;  %v2748_v22 = vld [vmem:[%s4203_s1 + $0xf4] sm:$0xf0]  ;;  %v2744_v23 = vld [vmem:[%s4203_s1 + $0xdc] sm:$0xf]  ;;  %v2110_v25 = vld [vmem:[%s4203_s1 + $0x90] sm:$0xf]  ;;  %v2143_v27 = vor.u32 %v2747_v17, %v2142_v14  ;;  %v2147_v30 = vor.u32 %v2743_v18, %v2144_v19 }
  0x24   :  { %442 = vmatmul.bf16.vlgmr.msra.gmra.mxu0 %v3289_v50  ;;  %456 = vmatmul.bf16.vlgmr.msra.gmra.mxu1 %v3289_v50  ;;  %v2152_v24 = vld [vmem:[%s4203_s1 + $0xf8] sm:$0xf0]  ;;  %v2739_v26 = vld [vmem:[%s4203_s1 + $0xac] sm:$0xf0]  ;;  %v2735_v28 = vld [vmem:[%s4203_s1 + $0x94] sm:$0xf]  ;;  %v2151_v31 = vor.u32 %v2748_v22, %v2150_v21 }
  0x25   :  { %490 = vmatpush.bf16.msrb.mxu0 %v2271_v40  ;;  %504 = vmatpush.bf16.msrb.mxu1 %v2275_v42  ;;  %v2112_v29 = vld [vmem:[%s4203_s1 + $0xb0] sm:$0xf0]  ;;  %v2155_v32 = vor.u32 %v2744_v23, %v2152_v24  ;;  %v2118_v33 = vld [vmem:[%s4203_s1 + $0x98] sm:$0xf] }
  0x26   :  { %518 = vmatpush.bf16.msrb.mxu2 %v2279_v43  ;;  %484 = vmatmul.bf16.vlgmr.msra.gmra.mxu3 %v3289_v50  ;;  %v2740_v34 = vld [vmem:[%s4203_s1 + $0xb4] sm:$0xf0] }
  0x27   :  { %532 = vmatpush.bf16.msrb.mxu3 %v2283_v47  ;;  %470 = vmatmul.bf16.vlgmr.msra.gmra.mxu2 %v3289_v50 }
  0x29   :  { %491 = vmatpush.bf16.msrb.mxu0 %v2239_v53  ;;  %505 = vmatpush.bf16.msrb.mxu1 %v2243_v54 }
  0x2a   :  { %519 = vmatpush.bf16.msrb.mxu2 %v2247_v55 }
  0x2b   :  { %533 = vmatpush.bf16.msrb.mxu3 %v2251_v59 }
  0x2d   :  { %492 = vmatpush.bf16.msrb.mxu0 %v2207_v1  ;;  %506 = vmatpush.bf16.msrb.mxu1 %v2211_v2 }
  0x2e   :  { %520 = vmatpush.bf16.msrb.mxu2 %v2215_v3 }
  0x2f   :  { %534 = vmatpush.bf16.msrb.mxu3 %v2219_v7 }
  0x31   :  { %493 = vmatpush.bf16.msrb.mxu0 %v2175_v13  ;;  %507 = vmatpush.bf16.msrb.mxu1 %v2179_v15 }
  0x32   :  { %521 = vmatpush.bf16.msrb.mxu2 %v2183_v16 }
  0x33   :  { %535 = vmatpush.bf16.msrb.mxu3 %v2187_v20 }
  0x34   :  { %17 = vsyncpa [#allocation3], 0  ;;  %v2736_v35 = vld [vmem:[%s4203_s1 + $0x9c] sm:$0xf]  ;;  %v2111_v37 = vor.u32 %v2739_v26, %v2110_v25  ;;  %v2115_v38 = vor.u32 %v2735_v28, %v2112_v29  ;;  %v2119_v39 = vor.u32 %v2740_v34, %v2118_v33  ;;  %v2078_v40 = vld [vmem:[%s4203_s1 + $0x50] sm:$0xf] }
  0x35   :  { %v2120_v36 = vld [vmem:[%s4203_s1 + $0xb8] sm:$0xf0]  ;;  %494 = vmatpush.bf16.msrb.mxu0 %v2143_v27  ;;  %508 = vmatpush.bf16.msrb.mxu1 %v2147_v30  ;;  %v2731_v41 = vld [vmem:[%s4203_s1 + $0x6c] sm:$0xf0]  ;;  %v2727_v42 = vld [vmem:[%s4203_s1 + $0x54] sm:$0xf] }
  0x36   :  { %522 = vmatpush.bf16.msrb.mxu2 %v2151_v31  ;;  %v2123_v43 = vor.u32 %v2736_v35, %v2120_v36  ;;  %v2080_v44 = vld [vmem:[%s4203_s1 + $0x70] sm:$0xf0]  ;;  %v2086_v45 = vld [vmem:[%s4203_s1 + $0x58] sm:$0xf]  ;;  %v2728_v47 = vld [vmem:[%s4203_s1 + $0x5c] sm:$0xf]  ;;  %v2079_v49 = vor.u32 %v2731_v41, %v2078_v40 }
  0x37   :  { %536 = vmatpush.bf16.msrb.mxu3 %v2155_v32  ;;  %v2732_v46 = vld [vmem:[%s4203_s1 + $0x74] sm:$0xf0]  ;;  %v2088_v48 = vld [vmem:[%s4203_s1 + $0x78] sm:$0xf0]  ;;  %v2046_v51 = vld [vmem:[%s4203_s1 + $0x10] sm:$0xf]  ;;  %v2083_v52 = vor.u32 %v2727_v42, %v2080_v44 }
  0x38   :  { %v2087_v53 = vor.u32 %v2732_v46, %v2086_v45  ;;  %v2723_v54 = vld [vmem:[%s4203_s1 + $0x2c] sm:$0xf0]  ;;  %v2719_v55 = vld [vmem:[%s4203_s1 + $0x14] sm:$0xf]  ;;  %v2091_v57 = vor.u32 %v2728_v47, %v2088_v48  ;;  %v2054_v58 = vld [vmem:[%s4203_s1 + $0x18] sm:$0xf] }
  0x39   :  { %495 = vmatpush.bf16.msrb.mxu0 %v2111_v37  ;;  %509 = vmatpush.bf16.msrb.mxu1 %v2115_v38  ;;  %v2048_v56 = vld [vmem:[%s4203_s1 + $0x30] sm:$0xf0]  ;;  %v2724_v59 = vld [vmem:[%s4203_s1 + $0x34] sm:$0xf0]  ;;  %v2720_v60 = vld [vmem:[%s4203_s1 + $0x1c] sm:$0xf]  ;;  %v2047_v0 = vor.u32 %v2723_v54, %v2046_v51 }
  0x3a   :  { %523 = vmatpush.bf16.msrb.mxu2 %v2119_v39  ;;  %v2056_v61 = vld [vmem:[%s4203_s1 + $0x38] sm:$0xf0]  ;;  %v2398_v62 = vld [vmem:[%s4205_s3 + $0xe0] sm:$0xf]  ;;  %v2811_v63 = vld [vmem:[%s4205_s3 + $0xec] sm:$0xf0]  ;;  %v2051_v3 = vor.u32 %v2719_v55, %v2048_v56  ;;  %v2055_v4 = vor.u32 %v2724_v59, %v2054_v58 }
  0x3b   :  { %537 = vmatpush.bf16.msrb.mxu3 %v2123_v43  ;;  %v2526_v1 = vld [vmem:[%s4205_s3 + $0x1e0] sm:$0xf]  ;;  %v2843_v2 = vld [vmem:[%s4205_s3 + $0x1ec] sm:$0xf0]  ;;  %v2059_v5 = vor.u32 %v2720_v60, %v2056_v61  ;;  %v2399_v6 = vor.u32 %v2811_v63, %v2398_v62  ;;  %v2809_v7 = vld [vmem:[%s4205_s3 + $0xe4] sm:$0xf] }
  0x3c   :  { %v2400_v8 = vld [vmem:[%s4205_s3 + $0xf0] sm:$0xf0]  ;;  %v2527_v9 = vor.u32 %v2843_v2, %v2526_v1  ;;  %v2841_v10 = vld [vmem:[%s4205_s3 + $0x1e4] sm:$0xf]  ;;  %v2382_v14 = vld [vmem:[%s4205_s3 + $0xc0] sm:$0xf] }
  0x3d   :  { %496 = vmatpush.bf16.msrb.mxu0 %v2079_v49  ;;  %510 = vmatpush.bf16.msrb.mxu1 %v2083_v52  ;;  %v2528_v11 = vld [vmem:[%s4205_s3 + $0x1f0] sm:$0xf0]  ;;  %v2403_v12 = vor.u32 %v2809_v7, %v2400_v8  ;;  %v2807_v15 = vld [vmem:[%s4205_s3 + $0xcc] sm:$0xf0]  ;;  %v2510_v16 = vld [vmem:[%s4205_s3 + $0x1c0] sm:$0xf] }
  0x3e   :  { %524 = vmatpush.bf16.msrb.mxu2 %v2087_v53  ;;  %v2531_v13 = vor.u32 %v2841_v10, %v2528_v11  ;;  %v2383_v17 = vor.u32 %v2807_v15, %v2382_v14  ;;  %v2839_v18 = vld [vmem:[%s4205_s3 + $0x1cc] sm:$0xf0]  ;;  %v2384_v19 = vld [vmem:[%s4205_s3 + $0xd0] sm:$0xf0]  ;;  %v2837_v22 = vld [vmem:[%s4205_s3 + $0x1c4] sm:$0xf] }
  0x3f   :  { %538 = vmatpush.bf16.msrb.mxu3 %v2091_v57  ;;  %v2511_v20 = vor.u32 %v2839_v18, %v2510_v16  ;;  %v2512_v23 = vld [vmem:[%s4205_s3 + $0x1d0] sm:$0xf0]  ;;  %v2366_v24 = vld [vmem:[%s4205_s3 + $0xa0] sm:$0xf]  ;;  %v2803_v26 = vld [vmem:[%s4205_s3 + $0xac] sm:$0xf0] }
  0x40   :  { %v2515_v25 = vor.u32 %v2837_v22, %v2512_v23  ;;  %v2494_v27 = vld [vmem:[%s4205_s3 + $0x1a0] sm:$0xf]  ;;  %v2835_v28 = vld [vmem:[%s4205_s3 + $0x1ac] sm:$0xf0]  ;;  %v2367_v29 = vor.u32 %v2803_v26, %v2366_v24  ;;  %v2801_v31 = vld [vmem:[%s4205_s3 + $0xa4] sm:$0xf] }
  0x41   :  { %497 = vmatpush.bf16.msrb.mxu0 %v2047_v0  ;;  %511 = vmatpush.bf16.msrb.mxu1 %v2051_v3  ;;  %v2495_v30 = vor.u32 %v2835_v28, %v2494_v27  ;;  %v2368_v32 = vld [vmem:[%s4205_s3 + $0xb0] sm:$0xf0]  ;;  %v2833_v33 = vld [vmem:[%s4205_s3 + $0x1a4] sm:$0xf]  ;;  %v2350_v37 = vld [vmem:[%s4205_s3 + $0x80] sm:$0xf] }
  0x42   :  { %525 = vmatpush.bf16.msrb.mxu2 %v2055_v4  ;;  %v2371_v34 = vor.u32 %v2801_v31, %v2368_v32  ;;  %v2496_v35 = vld [vmem:[%s4205_s3 + $0x1b0] sm:$0xf0]  ;;  %v2799_v38 = vld [vmem:[%s4205_s3 + $0x8c] sm:$0xf0]  ;;  %v2478_v39 = vld [vmem:[%s4205_s3 + $0x180] sm:$0xf] }
  0x43   :  { %539 = vmatpush.bf16.msrb.mxu3 %v2059_v5  ;;  %v2499_v36 = vor.u32 %v2833_v33, %v2496_v35  ;;  %v2351_v40 = vor.u32 %v2799_v38, %v2350_v37  ;;  %v2831_v41 = vld [vmem:[%s4205_s3 + $0x18c] sm:$0xf0]  ;;  %v2797_v42 = vld [vmem:[%s4205_s3 + $0x84] sm:$0xf]  ;;  %v2352_v43 = vld [vmem:[%s4205_s3 + $0x90] sm:$0xf0] }
  0x44   :  { %498 = vmatmul.bf16.vlgmr.msrb.gmra.mxu0 %v3289_v50  ;;  %512 = vmatmul.bf16.vlgmr.msrb.gmra.mxu1 %v3289_v50  ;;  %v2479_v44 = vor.u32 %v2831_v41, %v2478_v39  ;;  %v2355_v45 = vor.u32 %v2797_v42, %v2352_v43  ;;  %v2829_v46 = vld [vmem:[%s4205_s3 + $0x184] sm:$0xf]  ;;  %v2480_v47 = vld [vmem:[%s4205_s3 + $0x190] sm:$0xf0]  ;;  %v2334_v48 = vld [vmem:[%s4205_s3 + $0x60] sm:$0xf] }
  0x45   :  { %954 = vmatpush.bf16.msra.mxu0 %v2399_v6  ;;  %968 = vmatpush.bf16.msra.mxu1 %v2527_v9  ;;  %v2483_v49 = vor.u32 %v2829_v46, %v2480_v47  ;;  %v2795_v51 = vld [vmem:[%s4205_s3 + $0x6c] sm:$0xf0]  ;;  %v2462_v52 = vld [vmem:[%s4205_s3 + $0x160] sm:$0xf]  ;;  %v2793_v56 = vld [vmem:[%s4205_s3 + $0x64] sm:$0xf] }
  0x46   :  { %526 = vmatmul.bf16.vlgmr.msrb.gmra.mxu2 %v3289_v50  ;;  %540 = vmatmul.bf16.vlgmr.msrb.gmra.mxu3 %v3289_v50  ;;  %v2805_v50 = vld [vmem:[%s4205_s3 + $0xc4] sm:$0xf]  ;;  %v2827_v53 = vld [vmem:[%s4205_s3 + $0x16c] sm:$0xf0]  ;;  %v2335_v54 = vor.u32 %v2795_v51, %v2334_v48  ;;  %v2336_v57 = vld [vmem:[%s4205_s3 + $0x70] sm:$0xf0] }
  0x47   :  { %982 = vmatpush.bf16.msra.mxu2 %v2403_v12  ;;  %996 = vmatpush.bf16.msra.mxu3 %v2531_v13  ;;  %v2387_v21 = vor.u32 %v2805_v50, %v2384_v19  ;;  %v2463_v55 = vor.u32 %v2827_v53, %v2462_v52  ;;  %v2825_v58 = vld [vmem:[%s4205_s3 + $0x164] sm:$0xf]  ;;  %v2339_v59 = vor.u32 %v2793_v56, %v2336_v57  ;;  %v2464_v60 = vld [vmem:[%s4205_s3 + $0x170] sm:$0xf0]  ;;  %v2318_v61 = vld [vmem:[%s4205_s3 + $0x40] sm:$0xf] }
  0x48   :  { %v2791_v62 = vld [vmem:[%s4205_s3 + $0x4c] sm:$0xf0]  ;;  %v2467_v63 = vor.u32 %v2825_v58, %v2464_v60  ;;  %v2446_v0 = vld [vmem:[%s4205_s3 + $0x140] sm:$0xf]  ;;  %v2789_v2 = vld [vmem:[%s4205_s3 + $0x44] sm:$0xf] }
  0x49   :  { %955 = vmatpush.bf16.msra.mxu0 %v2383_v17  ;;  %969 = vmatpush.bf16.msra.mxu1 %v2511_v20  ;;  %v2823_v1 = vld [vmem:[%s4205_s3 + $0x14c] sm:$0xf0]  ;;  %v2319_v3 = vor.u32 %v2791_v62, %v2318_v61  ;;  %v2320_v4 = vld [vmem:[%s4205_s3 + $0x50] sm:$0xf0]  ;;  %v2821_v5 = vld [vmem:[%s4205_s3 + $0x144] sm:$0xf] }
  0x4a   :  { %v2448_v6 = vld [vmem:[%s4205_s3 + $0x150] sm:$0xf0]  ;;  %v2447_v7 = vor.u32 %v2823_v1, %v2446_v0  ;;  %v2323_v8 = vor.u32 %v2789_v2, %v2320_v4  ;;  %v2302_v10 = vld [vmem:[%s4205_s3 + $0x20] sm:$0xf]  ;;  %v2787_v11 = vld [vmem:[%s4205_s3 + $0x2c] sm:$0xf0] }
  0x4b   :  { %983 = vmatpush.bf16.msra.mxu2 %v2387_v21  ;;  %997 = vmatpush.bf16.msra.mxu3 %v2515_v25  ;;  %v2451_v9 = vor.u32 %v2821_v5, %v2448_v6  ;;  %v2430_v12 = vld [vmem:[%s4205_s3 + $0x120] sm:$0xf]  ;;  %v2303_v13 = vor.u32 %v2787_v11, %v2302_v10  ;;  %v2819_v14 = vld [vmem:[%s4205_s3 + $0x12c] sm:$0xf0]  ;;  %v2785_v15 = vld [vmem:[%s4205_s3 + $0x24] sm:$0xf] }
  0x4c   :  { %v2304_v16 = vld [vmem:[%s4205_s3 + $0x30] sm:$0xf0]  ;;  %v2431_v17 = vor.u32 %v2819_v14, %v2430_v12  ;;  %v2817_v50 = vld [vmem:[%s4205_s3 + $0x124] sm:$0xf]  ;;  %v2286_v21 = vld [vmem:[%s4205_s3] sm:$0xf] }
  0x4d   :  { %956 = vmatpush.bf16.msra.mxu0 %v2367_v29  ;;  %970 = vmatpush.bf16.msra.mxu1 %v2495_v30  ;;  %v2307_v18 = vor.u32 %v2785_v15, %v2304_v16  ;;  %v2432_v19 = vld [vmem:[%s4205_s3 + $0x130] sm:$0xf0]  ;;  %v2783_v22 = vld [vmem:[%s4205_s3 + $0xc] sm:$0xf0]  ;;  %v2414_v23 = vld [vmem:[%s4205_s3 + $0x100] sm:$0xf] }
  0x4e   :  { %v2435_v20 = vor.u32 %v2817_v50, %v2432_v19  ;;  %v2287_v24 = vor.u32 %v2783_v22, %v2286_v21  ;;  %v2815_v25 = vld [vmem:[%s4205_s3 + $0x10c] sm:$0xf0]  ;;  %v2781_v26 = vld [vmem:[%s4205_s3 + $0x4] sm:$0xf]  ;;  %v2288_v27 = vld [vmem:[%s4205_s3 + $0x10] sm:$0xf0] }
  0x4f   :  { %984 = vmatpush.bf16.msra.mxu2 %v2371_v34  ;;  %998 = vmatpush.bf16.msra.mxu3 %v2499_v36  ;;  %v2415_v28 = vor.u32 %v2815_v25, %v2414_v23  ;;  %v2291_v29 = vor.u32 %v2781_v26, %v2288_v27  ;;  %v2813_v30 = vld [vmem:[%s4205_s3 + $0x104] sm:$0xf]  ;;  %v2416_v31 = vld [vmem:[%s4205_s3 + $0x110] sm:$0xf0]  ;;  %v2406_v32 = vld [vmem:[%s4205_s3 + $0xe8] sm:$0xf] }
  0x50   :  { %v2419_v33 = vor.u32 %v2813_v30, %v2416_v31  ;;  %v2812_v34 = vld [vmem:[%s4205_s3 + $0xf4] sm:$0xf0]  ;;  %v2534_v35 = vld [vmem:[%s4205_s3 + $0x1e8] sm:$0xf]  ;;  %v2810_v39 = vld [vmem:[%s4205_s3 + $0xec] sm:$0xf] }
  0x51   :  { %957 = vmatpush.bf16.msra.mxu0 %v2351_v40  ;;  %971 = vmatpush.bf16.msra.mxu1 %v2479_v44  ;;  %v2844_v36 = vld [vmem:[%s4205_s3 + $0x1f4] sm:$0xf0]  ;;  %v2407_v37 = vor.u32 %v2812_v34, %v2406_v32  ;;  %v2408_v40 = vld [vmem:[%s4205_s3 + $0xf8] sm:$0xf0]  ;;  %v2842_v42 = vld [vmem:[%s4205_s3 + $0x1ec] sm:$0xf] }
  0x52   :  { %v2535_v38 = vor.u32 %v2844_v36, %v2534_v35  ;;  %v2411_v41 = vor.u32 %v2810_v39, %v2408_v40  ;;  %v2536_v43 = vld [vmem:[%s4205_s3 + $0x1f8] sm:$0xf0]  ;;  %v2808_v46 = vld [vmem:[%s4205_s3 + $0xd4] sm:$0xf0]  ;;  %v2518_v47 = vld [vmem:[%s4205_s3 + $0x1c8] sm:$0xf] }
  0x53   :  { %985 = vmatpush.bf16.msra.mxu2 %v2355_v45  ;;  %999 = vmatpush.bf16.msra.mxu3 %v2483_v49  ;;  %v2539_v44 = vor.u32 %v2842_v42, %v2536_v43  ;;  %v2390_v45 = vld [vmem:[%s4205_s3 + $0xc8] sm:$0xf]  ;;  %v2840_v49 = vld [vmem:[%s4205_s3 + $0x1d4] sm:$0xf0]  ;;  %v2806_v51 = vld [vmem:[%s4205_s3 + $0xcc] sm:$0xf] }
  0x54   :  { %v2391_v48 = vor.u32 %v2808_v46, %v2390_v45  ;;  %v2392_v52 = vld [vmem:[%s4205_s3 + $0xd8] sm:$0xf0]  ;;  %v2519_v53 = vor.u32 %v2840_v49, %v2518_v47  ;;  %v2374_v58 = vld [vmem:[%s4205_s3 + $0xa8] sm:$0xf]  ;;  %v2836_v62 = vld [vmem:[%s4205_s3 + $0x1b4] sm:$0xf0] }
  0x55   :  { %958 = vmatpush.bf16.msra.mxu0 %v2335_v54  ;;  %972 = vmatpush.bf16.msra.mxu1 %v2463_v55  ;;  %v2395_v54 = vor.u32 %v2806_v51, %v2392_v52  ;;  %v2838_v55 = vld [vmem:[%s4205_s3 + $0x1cc] sm:$0xf]  ;;  %v2520_v56 = vld [vmem:[%s4205_s3 + $0x1d8] sm:$0xf0]  ;;  %v2502_v60 = vld [vmem:[%s4205_s3 + $0x1a8] sm:$0xf] }
  0x56   :  { %v2523_v57 = vor.u32 %v2838_v55, %v2520_v56  ;;  %v2376_v0 = vld [vmem:[%s4205_s3 + $0xb8] sm:$0xf0]  ;;  %v2503_v1 = vor.u32 %v2836_v62, %v2502_v60  ;;  %v2832_v12 = vld [vmem:[%s4205_s3 + $0x194] sm:$0xf0]  ;;  %v2342_v21 = vld [vmem:[%s4205_s3 + $0x68] sm:$0xf] }
  0x57   :  { %986 = vmatpush.bf16.msra.mxu2 %v2339_v59  ;;  %1000 = vmatpush.bf16.msra.mxu3 %v2467_v63  ;;  %v2804_v59 = vld [vmem:[%s4205_s3 + $0xb4] sm:$0xf0]  ;;  %v2802_v63 = vld [vmem:[%s4205_s3 + $0xac] sm:$0xf]  ;;  %v2504_v4 = vld [vmem:[%s4205_s3 + $0x1b8] sm:$0xf0] }
  0x58   :  { %v2375_v61 = vor.u32 %v2804_v59, %v2374_v58  ;;  %v2379_v2 = vor.u32 %v2802_v63, %v2376_v0  ;;  %v2360_v14 = vld [vmem:[%s4205_s3 + $0x98] sm:$0xf0]  ;;  %v2796_v22 = vld [vmem:[%s4205_s3 + $0x74] sm:$0xf0]  ;;  %v2470_v23 = vld [vmem:[%s4205_s3 + $0x168] sm:$0xf] }
  0x59   :  { %959 = vmatpush.bf16.msra.mxu0 %v2319_v3  ;;  %973 = vmatpush.bf16.msra.mxu1 %v2447_v7  ;;  %v2834_v3 = vld [vmem:[%s4205_s3 + $0x1ac] sm:$0xf]  ;;  %v2358_v7 = vld [vmem:[%s4205_s3 + $0x88] sm:$0xf]  ;;  %v2488_v50 = vld [vmem:[%s4205_s3 + $0x198] sm:$0xf0] }
  0x5a   :  { %v2507_v5 = vor.u32 %v2834_v3, %v2504_v4  ;;  %v2828_v25 = vld [vmem:[%s4205_s3 + $0x174] sm:$0xf0]  ;;  %v2794_v26 = vld [vmem:[%s4205_s3 + $0x6c] sm:$0xf]  ;;  %v2344_v27 = vld [vmem:[%s4205_s3 + $0x78] sm:$0xf0] }
  0x5b   :  { %987 = vmatpush.bf16.msra.mxu2 %v2323_v8  ;;  %1001 = vmatpush.bf16.msra.mxu3 %v2451_v9  ;;  %v2800_v8 = vld [vmem:[%s4205_s3 + $0x94] sm:$0xf0]  ;;  %v2486_v9 = vld [vmem:[%s4205_s3 + $0x188] sm:$0xf]  ;;  %v2826_v30 = vld [vmem:[%s4205_s3 + $0x16c] sm:$0xf] }
  0x5c   :  { %v2359_v11 = vor.u32 %v2800_v8, %v2358_v7  ;;  %v2487_v16 = vor.u32 %v2832_v12, %v2486_v9  ;;  %v2472_v31 = vld [vmem:[%s4205_s3 + $0x178] sm:$0xf0]  ;;  %v2326_v32 = vld [vmem:[%s4205_s3 + $0x48] sm:$0xf]  ;;  %v2792_v34 = vld [vmem:[%s4205_s3 + $0x54] sm:$0xf0] }
  0x5d   :  { %960 = vmatpush.bf16.msra.mxu0 %v2303_v13  ;;  %974 = vmatpush.bf16.msra.mxu1 %v2431_v17  ;;  %v2798_v13 = vld [vmem:[%s4205_s3 + $0x8c] sm:$0xf]  ;;  %v2454_v35 = vld [vmem:[%s4205_s3 + $0x148] sm:$0xf]  ;;  %v2824_v36 = vld [vmem:[%s4205_s3 + $0x154] sm:$0xf0]  ;;  %v2327_v40 = vor.u32 %v2792_v34, %v2326_v32 }
  0x5e   :  { %v2363_v17 = vor.u32 %v2798_v13, %v2360_v14  ;;  %v2822_v39 = vld [vmem:[%s4205_s3 + $0x14c] sm:$0xf]  ;;  %v2456_v42 = vld [vmem:[%s4205_s3 + $0x158] sm:$0xf0]  ;;  %v2310_v43 = vld [vmem:[%s4205_s3 + $0x28] sm:$0xf] }
  0x5f   :  { %988 = vmatpush.bf16.msra.mxu2 %v2307_v18  ;;  %1002 = vmatpush.bf16.msra.mxu3 %v2435_v20  ;;  %v2830_v18 = vld [vmem:[%s4205_s3 + $0x18c] sm:$0xf]  ;;  %v2788_v46 = vld [vmem:[%s4205_s3 + $0x34] sm:$0xf0]  ;;  %v2438_v47 = vld [vmem:[%s4205_s3 + $0x128] sm:$0xf]  ;;  %v2459_v51 = vor.u32 %v2822_v39, %v2456_v42 }
  0x60   :  { %v2491_v20 = vor.u32 %v2830_v18, %v2488_v50  ;;  %v2786_v52 = vld [vmem:[%s4205_s3 + $0x2c] sm:$0xf]  ;;  %v2440_v56 = vld [vmem:[%s4205_s3 + $0x138] sm:$0xf0]  ;;  %v2311_v58 = vor.u32 %v2788_v46, %v2310_v43  ;;  %v2294_v60 = vld [vmem:[%s4205_s3 + $0x8] sm:$0xf] }
  0x61   :  { %961 = vmatpush.bf16.msra.mxu0 %v2287_v24  ;;  %975 = vmatpush.bf16.msra.mxu1 %v2415_v28  ;;  %v2343_v24 = vor.u32 %v2796_v22, %v2342_v21  ;;  %v2471_v28 = vor.u32 %v2828_v25, %v2470_v23  ;;  %v2818_v55 = vld [vmem:[%s4205_s3 + $0x12c] sm:$0xf]  ;;  %v2784_v62 = vld [vmem:[%s4205_s3 + $0x14] sm:$0xf0]  ;;  %v2422_v63 = vld [vmem:[%s4205_s3 + $0x108] sm:$0xf] }
  0x62   :  { %v2816_v0 = vld [vmem:[%s4205_s3 + $0x114] sm:$0xf0]  ;;  %v2296_v3 = vld [vmem:[%s4205_s3 + $0x18] sm:$0xf0]  ;;  %v2814_v4 = vld [vmem:[%s4205_s3 + $0x10c] sm:$0xf]  ;;  %v2295_v7 = vor.u32 %v2784_v62, %v2294_v60 }
  0x63   :  { %989 = vmatpush.bf16.msra.mxu2 %v2291_v29  ;;  %1003 = vmatpush.bf16.msra.mxu3 %v2419_v33  ;;  %v2347_v29 = vor.u32 %v2794_v26, %v2344_v27  ;;  %v2475_v33 = vor.u32 %v2826_v30, %v2472_v31  ;;  %v2423_v8 = vor.u32 %v2816_v0, %v2422_v63  ;;  %v558_v18 = vld [vmem:[%s4204_s2] sm:$0x3]  ;;  %v2875_v39 = vld [vmem:[%s4207_s5 + $0xec] sm:$0xf0]  ;;  %v2656_v42 = vld [vmem:[%s4207_s5 + $0xf0] sm:$0xf0] }
  0x64   :  { %v560_v26 = vperm.slane %v558_v18, 0  ;;  %v561_v32 = vperm.slane %v558_v18, 1  ;;  %v2662_v43 = vld [vmem:[%s4207_s5 + $0xe8] sm:$0xf]  ;;  %v2870_v60 = vld [vmem:[%s4207_s5 + $0xcc] sm:$0xf] }
  0x65   :  { %1010 = vmatpush.bf16.msrb.mxu0 %v2407_v37  ;;  %1024 = vmatpush.bf16.msrb.mxu1 %v2535_v38  ;;  %v2790_v37 = vld [vmem:[%s4205_s3 + $0x4c] sm:$0xf]  ;;  %v2328_v38 = vld [vmem:[%s4205_s3 + $0x58] sm:$0xf0]  ;;  %v2622_v63 = vld [vmem:[%s4207_s5 + $0xa0] sm:$0xf] }
  0x66   :  { %v2331_v45 = vor.u32 %v2790_v37, %v2328_v38  ;;  %v2654_v38 = vld [vmem:[%s4207_s5 + $0xe0] sm:$0xf]  ;;  %v2867_v0 = vld [vmem:[%s4207_s5 + $0xac] sm:$0xf0]  ;;  %v2608_v18 = vld [vmem:[%s4207_s5 + $0x90] sm:$0xf0] }
  0x67   :  { %1038 = vmatpush.bf16.msrb.mxu2 %v2411_v41  ;;  %1052 = vmatpush.bf16.msrb.mxu3 %v2539_v44  ;;  %v2455_v41 = vor.u32 %v2824_v36, %v2454_v35  ;;  %vm1426_vm4 = vcmask 261120   ;;  %s2986_s25 = smov [#allocation2]  }
  0x68   :  { %s2013_s26 = sshll.u32 %s2986_s25, 4  ;;  %s2014_s26 = int_to_ptr.vmem [resolvable:$true] %s2013_s26 }
  0x69   :  { %1011 = vmatpush.bf16.msrb.mxu0 %v2391_v48  ;;  %1025 = vmatpush.bf16.msrb.mxu1 %v2519_v53  ;;  %v2820_v48 = vld [vmem:[%s4205_s3 + $0x134] sm:$0xf0]  ;;  %v2312_v53 = vld [vmem:[%s4205_s3 + $0x38] sm:$0xf0] }
  0x6a   :  { %v2439_v59 = vor.u32 %v2820_v48, %v2438_v47  ;;  %v2874_v47 = vld [vmem:[%s4207_s5 + $0xec] sm:$0xf]  ;;  %v2664_v48 = vld [vmem:[%s4207_s5 + $0xf8] sm:$0xf0] }
  0x6b   :  { %1039 = vmatpush.bf16.msrb.mxu2 %v2395_v54  ;;  %1053 = vmatpush.bf16.msrb.mxu3 %v2523_v57 }
  0x6d   :  { %1012 = vmatpush.bf16.msrb.mxu0 %v2375_v61  ;;  %1026 = vmatpush.bf16.msrb.mxu1 %v2503_v1  ;;  %v2315_v61 = vor.u32 %v2786_v52, %v2312_v53  ;;  %v2443_v1 = vor.u32 %v2818_v55, %v2440_v56  ;;  %v2871_v52 = vld [vmem:[%s4207_s5 + $0xcc] sm:$0xf0]  ;;  %v2869_v53 = vld [vmem:[%s4207_s5 + $0xc4] sm:$0xf]  ;;  %v2640_v55 = vld [vmem:[%s4207_s5 + $0xd0] sm:$0xf0] }
  0x6e   :  { %v2646_v56 = vld [vmem:[%s4207_s5 + $0xc8] sm:$0xf] }
  0x6f   :  { %1040 = vmatpush.bf16.msrb.mxu2 %v2379_v2  ;;  %1054 = vmatpush.bf16.msrb.mxu3 %v2507_v5  ;;  %v2782_v2 = vld [vmem:[%s4205_s3 + $0xc] sm:$0xf]  ;;  %v2424_v5 = vld [vmem:[%s4205_s3 + $0x118] sm:$0xf0] }
  0x70   :  { %v2427_v13 = vor.u32 %v2814_v4, %v2424_v5  ;;  %v2630_v4 = vld [vmem:[%s4207_s5 + $0xa8] sm:$0xf]  ;;  %v2868_v5 = vld [vmem:[%s4207_s5 + $0xb4] sm:$0xf0] }
  0x71   :  { %1013 = vmatpush.bf16.msrb.mxu0 %v2359_v11  ;;  %1027 = vmatpush.bf16.msrb.mxu1 %v2487_v16  ;;  %v2299_v11 = vor.u32 %v2782_v2, %v2296_v3  ;;  %v2623_v2 = vor.u32 %v2867_v0, %v2622_v63  ;;  %v2624_v3 = vld [vmem:[%s4207_s5 + $0xb0] sm:$0xf0]  ;;  %v2845_v63 = vld [vmem:[%s4207_s5 + $0x4] sm:$0xf] }
  0x73   :  { %1041 = vmatpush.bf16.msrb.mxu2 %v2363_v17  ;;  %1055 = vmatpush.bf16.msrb.mxu3 %v2491_v20 }
  0x75   :  { %1014 = vmatpush.bf16.msrb.mxu0 %v2343_v24  ;;  %1028 = vmatpush.bf16.msrb.mxu1 %v2471_v28 }
  0x77   :  { %1042 = vmatpush.bf16.msrb.mxu2 %v2347_v29  ;;  %1056 = vmatpush.bf16.msrb.mxu3 %v2475_v33 }
  0x79   :  { %1015 = vmatpush.bf16.msrb.mxu0 %v2327_v40  ;;  %1029 = vmatpush.bf16.msrb.mxu1 %v2455_v41  ;;  %v2873_v40 = vld [vmem:[%s4207_s5 + $0xe4] sm:$0xf]  ;;  %v2655_v41 = vor.u32 %v2875_v39, %v2654_v38  ;;  %v2576_v38 = vld [vmem:[%s4207_s5 + $0x50] sm:$0xf0]  ;;  %v2582_v39 = vld [vmem:[%s4207_s5 + $0x48] sm:$0xf] }
  0x7b   :  { %1043 = vmatpush.bf16.msrb.mxu2 %v2331_v45  ;;  %1057 = vmatpush.bf16.msrb.mxu3 %v2459_v51  ;;  %v2659_v45 = vor.u32 %v2873_v40, %v2656_v42  ;;  %v2638_v51 = vld [vmem:[%s4207_s5 + $0xc0] sm:$0xf]  ;;  %v2854_v42 = vld [vmem:[%s4207_s5 + $0x4c] sm:$0xf] }
  0x7d   :  { %1016 = vmatpush.bf16.msrb.mxu0 %v2311_v58  ;;  %1030 = vmatpush.bf16.msrb.mxu1 %v2439_v59  ;;  %v2643_v58 = vor.u32 %v2869_v53, %v2640_v55  ;;  %v2560_v53 = vld [vmem:[%s4207_s5 + $0x30] sm:$0xf0]  ;;  %v2852_v55 = vld [vmem:[%s4207_s5 + $0x34] sm:$0xf0] }
  0x7f   :  { %1044 = vmatpush.bf16.msrb.mxu2 %v2315_v61  ;;  %1058 = vmatpush.bf16.msrb.mxu3 %v2443_v1  ;;  %v2648_v61 = vld [vmem:[%s4207_s5 + $0xd8] sm:$0xf0]  ;;  %v2865_v1 = vld [vmem:[%s4207_s5 + $0xa4] sm:$0xf] }
  0x80   :  { %v2651_v62 = vor.u32 %v2870_v60, %v2648_v61  ;;  %v2542_v61 = vld [vmem:[%s4207_s5] sm:$0xf] }
  0x81   :  { %1017 = vmatpush.bf16.msrb.mxu0 %v2295_v7  ;;  %1031 = vmatpush.bf16.msrb.mxu1 %v2423_v8  ;;  %v2627_v7 = vor.u32 %v2865_v1, %v2624_v3  ;;  %v2631_v8 = vor.u32 %v2868_v5, %v2630_v4  ;;  %v2544_v1 = vld [vmem:[%s4207_s5 + $0x10] sm:$0xf0]  ;;  %v2848_v3 = vld [vmem:[%s4207_s5 + $0x14] sm:$0xf0] }
  0x82   :  { %v2547_v5 = vor.u32 %v2845_v63, %v2544_v1  ;;  %v2890_v1 = vld [vmem:[%s4208_s6] ss:$0 sm:$0xff]  ;;  %s2984_s6 = smov 64  }
  0x83   :  { %1045 = vmatpush.bf16.msrb.mxu2 %v2299_v11  ;;  %1059 = vmatpush.bf16.msrb.mxu3 %v2427_v13  ;;  %v2632_v11 = vld [vmem:[%s4207_s5 + $0xb8] sm:$0xf0]  ;;  %v2606_v13 = vld [vmem:[%s4207_s5 + $0x80] sm:$0xf] }
  0xa1   :  { %v3713_v6 = vpop.f32.mrf.mxu0  ;;  %v3724_v10 = vpop.f32.mrf.mxu1 }
  0xa9   :  { %v3743_v19 = vpop.f32.mrf.mxu3  ;;  %v3796_v44 = vpop.f32.mrf.mxu0 }
  0xaa   :  { %v3735_v15 = vpop.f32.mrf.mxu2  ;;  %v459_v49 = vpop.f32.mrf.mxu1  ;;  %v547_v21 = vmax.f32 %v3724_v10, %v3743_v19 }
  0xab   :  { %v546_v20 = vmax.f32 %v3713_v6, %v3735_v15 }
  0xb1   :  { %v487_v57 = vpop.f32.mrf.mxu3 }
  0xb2   :  { %v473_v54 = vpop.f32.mrf.mxu2  ;;  %v549_v30 = vmax.f32 %v459_v49, %v487_v57  ;;  %v2667_v49 = vor.u32 %v2874_v47, %v2664_v48  ;;  %v2872_v57 = vld [vmem:[%s4207_s5 + $0xd4] sm:$0xf0]  ;;  %v2558_v47 = vld [vmem:[%s4207_s5 + $0x20] sm:$0xf]  ;;  %v2851_v48 = vld [vmem:[%s4207_s5 + $0x2c] sm:$0xf0] }
  0xb3   :  { %v548_v24 = vmax.f32 %v3796_v44, %v473_v54  ;;  %v2876_v44 = vld [vmem:[%s4207_s5 + $0xf4] sm:$0xf0]  ;;  %v2639_v54 = vor.u32 %v2871_v52, %v2638_v51  ;;  %v2647_v59 = vor.u32 %v2872_v57, %v2646_v56  ;;  %v2559_v52 = vor.u32 %v2851_v48, %v2558_v47  ;;  %v4072_v47 = vld [vmem:[%s4211_s9 + $0x10] sm:$0xff]  ;;  %v2878_v48 = vld [vmem:[%s4209_s7 + $0x8] sm:$0xff] }
  0xb4   :  { %v2663_v46 = vor.u32 %v2876_v44, %v2662_v43  ;;  %v2584_v43 = vld [vmem:[%s4207_s5 + $0x58] sm:$0xf0] }
  0xc1   :  { %v499_v9 = vpop.f32.mrf.mxu0  ;;  %v513_v12 = vpop.f32.mrf.mxu1 }
  0xc9   :  { %v527_v14 = vpop.f32.mrf.mxu2  ;;  %v541_v16 = vpop.f32.mrf.mxu3 }
  0xca   :  { %v550_v17 = vmax.f32 %v499_v9, %v527_v14  ;;  %v551_v50 = vmax.f32 %v513_v12, %v541_v16  ;;  %v501_v22 = vpop.f32.mrf.mxu0  ;;  %v515_v27 = vpop.f32.mrf.mxu1  ;;  %v2866_v9 = vld [vmem:[%s4207_s5 + $0xac] sm:$0xf]  ;;  %v2863_v14 = vld [vmem:[%s4207_s5 + $0x8c] sm:$0xf0]  ;;  %v2861_v16 = vld [vmem:[%s4207_s5 + $0x84] sm:$0xf] }
  0xcb   :  { %v2635_v12 = vor.u32 %v2866_v9, %v2632_v11  ;;  %v2552_v9 = vld [vmem:[%s4207_s5 + $0x18] sm:$0xf0] }
  0xcc   :  { %v554_v25 = vmax.f32 %v546_v20, %v550_v17  ;;  %v555_v31 = vmax.f32 %v547_v21, %v551_v50  ;;  %v2607_v17 = vor.u32 %v2863_v14, %v2606_v13  ;;  %v2614_v50 = vld [vmem:[%s4207_s5 + $0x88] sm:$0xf]  ;;  %v2864_v20 = vld [vmem:[%s4207_s5 + $0x94] sm:$0xf0]  ;;  %v2611_v21 = vor.u32 %v2861_v16, %v2608_v18 }
  0xcd   :  { %v2884_v16 = vld [vmem:[%s4209_s7 + $0x38] sm:$0xff] }
  0xce   :  { %v564_v36 = vadd.f32 %v560_v26, %v554_v25  ;;  %v565_v15 = vadd.f32 %v561_v32, %v555_v31  ;;  %v2598_v31 = vld [vmem:[%s4207_s5 + $0x68] sm:$0xf] }
  0xd1   :  { %v529_v23 = vpop.f32.mrf.mxu2  ;;  %v543_v29 = vpop.f32.mrf.mxu3 }
  0xd2   :  { %v552_v28 = vmax.f32 %v501_v22, %v529_v23  ;;  %v553_v33 = vmax.f32 %v515_v27, %v543_v29  ;;  %v2615_v22 = vor.u32 %v2864_v20, %v2614_v50  ;;  %v2862_v23 = vld [vmem:[%s4207_s5 + $0x8c] sm:$0xf]  ;;  %v2859_v27 = vld [vmem:[%s4207_s5 + $0x6c] sm:$0xf0] }
  0xd4   :  { %v556_v34 = vmax.f32 %v548_v24, %v552_v28  ;;  %v557_v35 = vmax.f32 %v549_v30, %v553_v33  ;;  %v2616_v24 = vld [vmem:[%s4207_s5 + $0x98] sm:$0xf0]  ;;  %v2857_v28 = vld [vmem:[%s4207_s5 + $0x64] sm:$0xf]  ;;  %v2592_v30 = vld [vmem:[%s4207_s5 + $0x70] sm:$0xf0] }
  0xd5   :  { %v2619_v25 = vor.u32 %v2862_v23, %v2616_v24  ;;  %v2595_v33 = vor.u32 %v2857_v28, %v2592_v30 }
  0xd6   :  { %v566_v6 = vadd.f32 %v560_v26, %v556_v34  ;;  %v567_v37 = vadd.f32 %v561_v32, %v557_v35  ;;  %v2590_v26 = vld [vmem:[%s4207_s5 + $0x60] sm:$0xf]  ;;  %v2860_v32 = vld [vmem:[%s4207_s5 + $0x74] sm:$0xf0]  ;;  %v2858_v35 = vld [vmem:[%s4207_s5 + $0x6c] sm:$0xf] }
  0xd7   :  { %v2591_v29 = vor.u32 %v2859_v27, %v2590_v26  ;;  %v2599_v34 = vor.u32 %v2860_v32, %v2598_v31 }
  0xd8   :  { %v568_v10 = vpack.c.bf16 %v566_v6, %v564_v36  ;;  %v569_v19 = vpack.c.bf16 %v567_v37, %v565_v15  ;;  %v2600_v36 = vld [vmem:[%s4207_s5 + $0x78] sm:$0xf0]  ;;  %v2574_v15 = vld [vmem:[%s4207_s5 + $0x40] sm:$0xf]  ;;  %v2855_v37 = vld [vmem:[%s4207_s5 + $0x4c] sm:$0xf0] }
  0xd9   :  { %v2603_v6 = vor.u32 %v2858_v35, %v2600_v36 }
  0xda   :  { %962 = vmatmul.bf16.vlgmr.msra.gmra.mxu0 %v568_v10  ;;  %990 = vmatmul.bf16.vlgmr.msra.gmra.mxu2 %v568_v10 }
  0xdb   :  { %976 = vmatmul.bf16.vlgmr.msra.gmra.mxu1 %v569_v19  ;;  %1004 = vmatmul.bf16.vlgmr.msra.gmra.mxu3 %v569_v19 }
  0xdc   :  { %1271 = vmatpush.bf16.msra.mxu0 %v2655_v41  ;;  %1285 = vmatpush.bf16.msra.mxu1 %v2659_v45  ;;  %v2856_v41 = vld [vmem:[%s4207_s5 + $0x54] sm:$0xf0]  ;;  %v2587_v45 = vor.u32 %v2854_v42, %v2584_v43  ;;  %v2882_v42 = vld [vmem:[%s4209_s7 + $0x28] sm:$0xff]  ;;  %v2881_v43 = vld [vmem:[%s4209_s7 + $0x20] sm:$0xff] }
  0xdd   :  { %1299 = vmatpush.bf16.msra.mxu2 %v2663_v46  ;;  %1313 = vmatpush.bf16.msra.mxu3 %v2667_v49  ;;  %v2583_v44 = vor.u32 %v2856_v41, %v2582_v39  ;;  %v2849_v49 = vld [vmem:[%s4207_s5 + $0x24] sm:$0xf] }
  0xde   :  { %v2563_v56 = vor.u32 %v2849_v49, %v2560_v53  ;;  %v2877_v49 = vld [vmem:[%s4209_s7] sm:$0xff]  ;;  %v2983_v53 = vmov 0.0  }
  0xe0   :  { %1272 = vmatpush.bf16.msra.mxu0 %v2639_v54  ;;  %1286 = vmatpush.bf16.msra.mxu1 %v2643_v58  ;;  %v2566_v54 = vld [vmem:[%s4207_s5 + $0x28] sm:$0xf]  ;;  %v2850_v58 = vld [vmem:[%s4207_s5 + $0x2c] sm:$0xf] }
  0xe1   :  { %1300 = vmatpush.bf16.msra.mxu2 %v2647_v59  ;;  %1314 = vmatpush.bf16.msra.mxu3 %v2651_v62  ;;  %v2567_v57 = vor.u32 %v2852_v55, %v2566_v54  ;;  %v2568_v59 = vld [vmem:[%s4207_s5 + $0x38] sm:$0xf0]  ;;  %v2847_v62 = vld [vmem:[%s4207_s5 + $0xc] sm:$0xf0] }
  0xe2   :  { %v2571_v60 = vor.u32 %v2850_v58, %v2568_v59  ;;  %v2543_v0 = vor.u32 %v2847_v62, %v2542_v61 }
  0xe4   :  { %1273 = vmatpush.bf16.msra.mxu0 %v2623_v2  ;;  %1287 = vmatpush.bf16.msra.mxu1 %v2627_v7  ;;  %v2550_v2 = vld [vmem:[%s4207_s5 + $0x8] sm:$0xf] }
  0xe5   :  { %1301 = vmatpush.bf16.msra.mxu2 %v2631_v8  ;;  %1315 = vmatpush.bf16.msra.mxu3 %v2635_v12  ;;  %v2551_v7 = vor.u32 %v2848_v3, %v2550_v2  ;;  %v2846_v8 = vld [vmem:[%s4207_s5 + $0xc] sm:$0xf] }
  0xe6   :  { %v2555_v12 = vor.u32 %v2846_v8, %v2552_v9  ;;  %v4124_v9 = vld [vmem:[%s4210_s8] ss:$0 sm:$0xff]  ;;  %s2985_s8 = smov 32  }
  0xe8   :  { %1274 = vmatpush.bf16.msra.mxu0 %v2607_v17  ;;  %1288 = vmatpush.bf16.msra.mxu1 %v2611_v21  ;;  %v2883_v17 = vld [vmem:[%s4209_s7 + $0x30] sm:$0xff] }
  0xe9   :  { %1302 = vmatpush.bf16.msra.mxu2 %v2615_v22  ;;  %1316 = vmatpush.bf16.msra.mxu3 %v2619_v25 }
  0xea   :  { %1018 = vmatmul.bf16.vlgmr.msrb.gmra.mxu0 %v568_v10  ;;  %1046 = vmatmul.bf16.vlgmr.msrb.gmra.mxu2 %v568_v10  ;;  %v2575_v10 = vor.u32 %v2855_v37, %v2574_v15 }
  0xeb   :  { %1032 = vmatmul.bf16.vlgmr.msrb.gmra.mxu1 %v569_v19  ;;  %1060 = vmatmul.bf16.vlgmr.msrb.gmra.mxu3 %v569_v19  ;;  %v2853_v19 = vld [vmem:[%s4207_s5 + $0x44] sm:$0xf] }
  0xec   :  { %1275 = vmatpush.bf16.msra.mxu0 %v2591_v29  ;;  %1289 = vmatpush.bf16.msra.mxu1 %v2595_v33  ;;  %v2579_v40 = vor.u32 %v2853_v19, %v2576_v38 }
  0xed   :  { %1303 = vmatpush.bf16.msra.mxu2 %v2599_v34  ;;  %1317 = vmatpush.bf16.msra.mxu3 %v2603_v6 }
  0xf0   :  { %1276 = vmatpush.bf16.msra.mxu0 %v2575_v10  ;;  %1290 = vmatpush.bf16.msra.mxu1 %v2579_v40  ;;  %v2889_v10 = vld [vmem:[%s4206_s4] ss:$0 sm:$0xff] }
  0xf1   :  { %1304 = vmatpush.bf16.msra.mxu2 %v2583_v44  ;;  %1318 = vmatpush.bf16.msra.mxu3 %v2587_v45  ;;  %v2880_v44 = vld [vmem:[%s4209_s7 + $0x18] sm:$0xff]  ;;  %v2879_v45 = vld [vmem:[%s4209_s7 + $0x10] sm:$0xff] }
  0xf4   :  { %1277 = vmatpush.bf16.msra.mxu0 %v2559_v52  ;;  %1291 = vmatpush.bf16.msra.mxu1 %v2563_v56  ;;  %v4094_v52 = vld [vmem:[%s4211_s9] sm:$0xff] }
  0xf5   :  { %1305 = vmatpush.bf16.msra.mxu2 %v2567_v57  ;;  %1319 = vmatpush.bf16.msra.mxu3 %v2571_v60 }
  0xf8   :  { %1278 = vmatpush.bf16.msra.mxu0 %v2543_v0  ;;  %1292 = vmatpush.bf16.msra.mxu1 %v2547_v5 }
  0xf9   :  { %1306 = vmatpush.bf16.msra.mxu2 %v2551_v7  ;;  %1320 = vmatpush.bf16.msra.mxu3 %v2555_v12 }
  0xfc   :  { %1408 = vmatpush.bf16.msrb.mxu0 %v2884_v16 }
 0x100   :  { %1409 = vmatpush.bf16.msrb.mxu0 %v2883_v17 }
 0x104   :  { %1410 = vmatpush.bf16.msrb.mxu0 %v2882_v42 }
 0x108   :  { %1411 = vmatpush.bf16.msrb.mxu0 %v2881_v43 }
 0x10c   :  { %1412 = vmatpush.bf16.msrb.mxu0 %v2880_v44 }
 0x110   :  { %1413 = vmatpush.bf16.msrb.mxu0 %v2879_v45 }
 0x114   :  { %1414 = vmatpush.bf16.msrb.mxu0 %v2878_v48 }
 0x118   :  { %1415 = vmatpush.bf16.msrb.mxu0 %v2877_v49 }
 0x157   :  { %v963_v46 = vpop.f32.mrf.mxu0 }
 0x158   :  { %v977_v51 = vpop.f32.mrf.mxu1 }
 0x159   :  { %v978_v29 = vadd.f32 %v977_v51, %v963_v46  ;;  %v4067_v46 = vld [vmem:[%s4211_s9 + $0x18] sm:$0xff]  ;;  %v4089_v51 = vld [vmem:[%s4211_s9 + $0x8] sm:$0xff] }
 0x15a   :  { %1442 = vmatpush.msrb.mxu1 %v4067_v46  ;;  %1505 = vmatpush.msrb.mxu2 %v4067_v46 }
 0x15b   :  { %1575 = vmatpush.msrb.mxu3 %v4067_v46 }
 0x15c   :  { %1443 = vmatpush.msrb.mxu1 %v4072_v47  ;;  %1506 = vmatpush.msrb.mxu2 %v4072_v47 }
 0x15d   :  { %v991_v4 = vpop.f32.mrf.mxu2  ;;  %1576 = vmatpush.msrb.mxu3 %v4072_v47 }
 0x15e   :  { %v1005_v11 = vpop.f32.mrf.mxu3  ;;  %1444 = vmatpush.msrb.mxu1 %v4089_v51  ;;  %1507 = vmatpush.msrb.mxu2 %v4089_v51 }
 0x15f   :  { %v965_v13 = vpop.f32.mrf.mxu0  ;;  %v1006_v25 = vadd.f32 %v1005_v11, %v991_v4  ;;  %1577 = vmatpush.msrb.mxu3 %v4089_v51 }
 0x160   :  { %v979_v14 = vpop.f32.mrf.mxu1  ;;  %1445 = vmatpush.msrb.mxu1 %v4094_v52  ;;  %1508 = vmatpush.msrb.mxu2 %v4094_v52 }
 0x161   :  { %v1066_v34 = vmax.f32 %v978_v29, %v1006_v25  ;;  %v980_v35 = vadd.f32 %v979_v14, %v965_v13  ;;  %1578 = vmatpush.msrb.mxu3 %v4094_v52 }
 0x165   :  { %v993_v18 = vpop.f32.mrf.mxu2 }
 0x166   :  { %v1007_v50 = vpop.f32.mrf.mxu3 }
 0x167   :  { %v1019_v20 = vpop.f32.mrf.mxu0  ;;  %v1008_v30 = vadd.f32 %v1007_v50, %v993_v18 }
 0x168   :  { %v1033_v21 = vpop.f32.mrf.mxu1 }
 0x169   :  { %v1034_v26 = vadd.f32 %v1033_v21, %v1019_v20  ;;  %v1067_v15 = vmax.f32 %v980_v35, %v1008_v30 }
 0x16d   :  { %v1047_v22 = vpop.f32.mrf.mxu2 }
 0x16e   :  { %v1061_v23 = vpop.f32.mrf.mxu3 }
 0x16f   :  { %v1062_v24 = vadd.f32 %v1061_v23, %v1047_v22  ;;  %v1021_v27 = vpop.f32.mrf.mxu0 }
 0x170   :  { %v1035_v28 = vpop.f32.mrf.mxu1 }
 0x171   :  { %v1068_v31 = vmax.f32 %v1034_v26, %v1062_v24  ;;  %v1036_v36 = vadd.f32 %v1035_v28, %v1021_v27 }
 0x173   :  { %v1070_v37 = vmax.f32 %v1066_v34, %v1068_v31 }
 0x175   :  { %v1049_v32 = vpop.f32.mrf.mxu2  ;;  %v1076_v39 = vadd.f32 %v2889_v10, %v1070_v37 }
 0x176   :  { %v1063_v33 = vpop.f32.mrf.mxu3 }
 0x177   :  { %v1064_v6 = vadd.f32 %v1063_v33, %v1049_v32 }
 0x179   :  { %v1069_v19 = vmax.f32 %v1036_v36, %v1064_v6 }
 0x17b   :  { %v1071_v38 = vmax.f32 %v1067_v15, %v1069_v19 }
 0x17d   :  { %v1077_v40 = vadd.f32 %v2889_v10, %v1071_v38 }
 0x17f   :  { %v1078_v41 = vpack.c.bf16 %v1077_v40, %v1076_v39 }
 0x181   :  { %1279 = vmatmul.bf16.vlgmr.msra.gmra.mxu0 %v1078_v41  ;;  %1293 = vmatmul.bf16.vlgmr.msra.gmra.mxu1 %v1078_v41 }
 0x182   :  { %1307 = vmatmul.bf16.vlgmr.msra.gmra.mxu2 %v1078_v41  ;;  %1321 = vmatmul.bf16.vlgmr.msra.gmra.mxu3 %v1078_v41 }
 0x183   :  { %1645 = vmatpush.msra.mxu1 %v4067_v46  ;;  %1715 = vmatpush.msra.mxu2 %v4067_v46 }
 0x184   :  { %1781 = vmatpush.msra.mxu3 %v4067_v46 }
 0x185   :  { %1646 = vmatpush.msra.mxu1 %v4072_v47  ;;  %1716 = vmatpush.msra.mxu2 %v4072_v47 }
 0x186   :  { %1782 = vmatpush.msra.mxu3 %v4072_v47 }
 0x187   :  { %1647 = vmatpush.msra.mxu1 %v4089_v51  ;;  %1717 = vmatpush.msra.mxu2 %v4089_v51 }
 0x188   :  { %1783 = vmatpush.msra.mxu3 %v4089_v51 }
 0x189   :  { %1648 = vmatpush.msra.mxu1 %v4094_v52  ;;  %1718 = vmatpush.msra.mxu2 %v4094_v52 }
 0x18a   :  { %1784 = vmatpush.msra.mxu3 %v4094_v52 }
 0x191   :  { %1446 = vmatmul.f32.vlgmr.msrb.gmra.mxu1 %v2983_v53 }
 0x192   :  { %1851 = vmatpush.msrb.mxu1 %v4067_v46 }
 0x194   :  { %1852 = vmatpush.msrb.mxu1 %v4072_v47 }
 0x196   :  { %1853 = vmatpush.msrb.mxu1 %v4089_v51 }
 0x198   :  { %1854 = vmatpush.msrb.mxu1 %v4094_v52 }
 0x1fe   :  { %v1280_v54 = vpop.f32.mrf.mxu0  ;;  %v1294_v55 = vpop.f32.mrf.mxu1 }
 0x1ff   :  { %v1327_v61 = vmax.f32 %v1280_v54, %v1294_v55 }
 0x205   :  { %v1308_v56 = vpop.f32.mrf.mxu2  ;;  %v1322_v57 = vpop.f32.mrf.mxu3 }
 0x206   :  { %v1329_v58 = vmax.f32 %v1308_v56, %v1322_v57  ;;  %v1282_v59 = vpop.f32.mrf.mxu0  ;;  %v1296_v60 = vpop.f32.mrf.mxu1 }
 0x207   :  { %v1328_v2 = vmax.f32 %v1282_v59, %v1296_v60 }
 0x208   :  { %v1331_v0 = vmax.f32 %v1327_v61, %v1329_v58 }
 0x20a   :  { %v1337_v5 = vadd.f32 %v2890_v1, %v1331_v0 }
 0x20d   :  { %v1310_v62 = vpop.f32.mrf.mxu2  ;;  %v1324_v63 = vpop.f32.mrf.mxu3 }
 0x20e   :  { %v1330_v3 = vmax.f32 %v1310_v62, %v1324_v63  ;;  %v1447_v12 = vpop.f32.mrf.mxu1 }
 0x210   :  { %v1332_v4 = vmax.f32 %v1328_v2, %v1330_v3 }
 0x212   :  { %v1338_v7 = vadd.f32 %v2890_v1, %v1332_v4 }
 0x214   :  { %v1339_v8 = vpack.c.bf16 %v1338_v7, %v1337_v5 }
 0x216   :  { %1416 = vmatmul.bf16.vlgmr.msrb.gmra.mxu0 %v1339_v8 }
 0x293   :  { %v1417_v11 = vpop.f32.mrf.mxu0 }
 0x294   :  { %v4127_v13 = vadd.f32 %v4124_v9, %v1417_v11 }
 0x296   :  { %v1450_v14 = vadd.f32 %v1447_v12, %v4127_v13 }
 0x298   :  { %2893 = vtanh.f32 %v1450_v14  ;;  %v2700_v17 = vmul.f32 -1.442695, %v1450_v14 }
 0x29a   :  { %2895 = vpow2.f32 %v2700_v17 }
 0x29e   :  { %v2894_v16 = vpop.eup %2893 }
 0x29f   :  { %1473 = vrot.lane.b32.xlu0 %v2894_v16, %s2984_s6 }
 0x2a0   :  { %v2896_v18 = vpop.eup %2895 }
 0x2a1   :  { %v1454_v50 = vadd.f32 1.0, %v2896_v18 }
 0x2a3   :  { %2897 = vrcp.f32 %v1454_v50  ;;  %v1466_v25 = vand.u32 2147483648, %v1454_v50  ;;  %vm1460_vm1 = vweird.f32 %v1454_v50  ;;  %v1464_v26 = vand.u32 2147483647, %v1454_v50 }
 0x2a5   :  { %v1467_v28 = vor.u32 1.1754944e-38, %v1466_v25  ;;  %vm1465_vm3 = vcmp.eq.f32.partialorder %v1464_v26, 8.507059e+37 }
 0x2a9   :  { %v2898_v20 = vpop.eup %2897 }
 0x2aa   :  { %v1456_v21 = vmul.f32 %v2898_v20, %v1454_v50  ;;  %vm1461_vm0 = vweird.f32 %v2898_v20 }
 0x2ab   :  { %vm1462_vm2 = vmor %vm1460_vm1, %vm1461_vm0 }
 0x2ac   :  { %v1457_v22 = vsub.f32 1.0, %v1456_v21 }
 0x2ae   :  { %v1458_v23 = vmul.f32 %v2898_v20, %v1457_v22 }
 0x2b0   :  { %v1459_v24 = vadd.f32 %v2898_v20, %v1458_v23 }
 0x2b2   :  { %v1463_v27 = vsel %vm1462_vm2, %v2898_v20, %v1459_v24 }
 0x2b3   :  { %v1468_v30 = vsel %vm1465_vm3, %v1467_v28, %v1463_v27 }
 0x2b4   :  { %v1471_v32 = vmul.f32 0.0, %v1468_v30 }
 0x311   :  { %v1474_v29 = vpop.permute.xlu0 %1473 }
 0x312   :  { %v1476_v31 = vmul.f32 %v1474_v29, %v1468_v30 }
 0x314   :  { %1478 = vrot.lane.b32.xlu0 %v1476_v31, %s2985_s8 }
 0x386   :  { %v1479_v33 = vpop.permute.xlu0 %1478 }
 0x387   :  { %v1481_v34 = vadd.f32 %v1479_v33, %v1471_v32 }
 0x389   :  { %2899 = vtanh.f32 %v1481_v34  ;;  %v1538_v55 = vrot.slane %v1481_v34, 6 }
 0x38f   :  { %v2900_v35 = vpop.eup %2899 }
 0x390   :  { %1484 = vrot.lane.b32.xlu1 %v2900_v35, %s2984_s6 }
 0x402   :  { %v1485_v36 = vpop.permute.xlu1 %1484 }
 0x403   :  { %v1487_v6 = vmul.f32 %v1485_v36, %v1468_v30 }
 0x405   :  { %1489 = vrot.lane.b32.xlu1 %v1487_v6, %s2985_s8 }
 0x477   :  { %v1490_v15 = vpop.permute.xlu1 %1489 }
 0x478   :  { %2701 = vmatmul.msk.f32.vlgmr.msrb.gmra.mxu2 %vm1426_vm4, %v1490_v15 }
 0x479   :  { %1921 = vmatpush.msrb.mxu2 %v4067_v46 }
 0x47b   :  { %1922 = vmatpush.msrb.mxu2 %v4072_v47 }
 0x47d   :  { %1923 = vmatpush.msrb.mxu2 %v4089_v51 }
 0x47f   :  { %1924 = vmatpush.msrb.mxu2 %v4094_v52 }
 0x4fb   :  { %v1510_v37 = vpop.f32.mrf.mxu2 }
 0x4fc   :  { %v1514_v10 = vrot.slane %v1510_v37, 6 }
 0x4fe   :  { %v1516_v19 = vadd.f32 %v1514_v10, %v4127_v13 }
 0x500   :  { %2901 = vtanh.f32 %v1516_v19  ;;  %v2702_v39 = vmul.f32 -1.442695, %v1516_v19 }
 0x502   :  { %2903 = vpow2.f32 %v2702_v39 }
 0x506   :  { %v2902_v38 = vpop.eup %2901 }
 0x507   :  { %1542 = vrot.lane.b32.xlu2 %v2902_v38, %s2984_s6 }
 0x508   :  { %v2904_v40 = vpop.eup %2903 }
 0x509   :  { %v1520_v41 = vadd.f32 1.0, %v2904_v40 }
 0x50b   :  { %2905 = vrcp.f32 %v1520_v41  ;;  %v1532_v47 = vand.u32 2147483648, %v1520_v41  ;;  %vm1526_vm6 = vweird.f32 %v1520_v41  ;;  %v1530_v48 = vand.u32 2147483647, %v1520_v41 }
 0x50d   :  { %v1533_v51 = vor.u32 1.1754944e-38, %v1532_v47  ;;  %vm1531_vm8 = vcmp.eq.f32.partialorder %v1530_v48, 8.507059e+37 }
 0x511   :  { %v2906_v42 = vpop.eup %2905 }
 0x512   :  { %v1522_v43 = vmul.f32 %v2906_v42, %v1520_v41  ;;  %vm1527_vm5 = vweird.f32 %v2906_v42 }
 0x513   :  { %vm1528_vm7 = vmor %vm1526_vm6, %vm1527_vm5 }
 0x514   :  { %v1523_v44 = vsub.f32 1.0, %v1522_v43 }
 0x516   :  { %v1524_v45 = vmul.f32 %v2906_v42, %v1523_v44 }
 0x518   :  { %v1525_v46 = vadd.f32 %v2906_v42, %v1524_v45 }
 0x51a   :  { %v1529_v49 = vsel %vm1528_vm7, %v2906_v42, %v1525_v46 }
 0x51b   :  { %v1534_v53 = vsel %vm1531_vm8, %v1533_v51, %v1529_v49 }
 0x51c   :  { %v1540_v56 = vmul.f32 %v1538_v55, %v1534_v53 }
 0x561   :  { %v1543_v52 = vpop.permute.xlu2 %1542 }
 0x562   :  { %v1545_v54 = vmul.f32 %v1543_v52, %v1534_v53 }
 0x564   :  { %1547 = vrot.lane.b32.xlu2 %v1545_v54, %s2985_s8 }
 0x5be   :  { %v1548_v57 = vpop.permute.xlu2 %1547 }
 0x5bf   :  { %v1550_v58 = vadd.f32 %v1548_v57, %v1540_v56  ;;  %v1419_v57 = vpop.f32.mrf.mxu0 }
 0x5c1   :  { %2907 = vtanh.f32 %v1550_v58  ;;  %v1608_v24 = vrot.slane %v1550_v58, 6  ;;  %v4158_v58 = vadd.f32 %v4124_v9, %v1419_v57 }
 0x5c7   :  { %v2908_v59 = vpop.eup %2907 }
 0x5c8   :  { %1553 = vrot.lane.b32.xlu0 %v2908_v59, %s2984_s6 }
 0x63a   :  { %v1554_v60 = vpop.permute.xlu0 %1553 }
 0x63b   :  { %v1556_v61 = vmul.f32 %v1554_v60, %v1534_v53 }
 0x63d   :  { %v1558_v62 = vrot.slane %v1556_v61, 2 }
 0x63f   :  { %1559 = vrot.lane.b32.xlu1 %v1558_v62, %s2985_s8 }
 0x6b1   :  { %v1560_v63 = vpop.permute.xlu1 %1559 }
 0x6b2   :  { %2703 = vmatmul.msk.f32.vlgmr.msrb.gmra.mxu3 %vm1426_vm4, %v1560_v63 }
 0x735   :  { %v1580_v0 = vpop.f32.mrf.mxu3 }
 0x736   :  { %v1584_v1 = vrot.slane %v1580_v0, 4 }
 0x738   :  { %v1586_v2 = vadd.f32 %v1584_v1, %v4127_v13 }
 0x73a   :  { %2909 = vtanh.f32 %v1586_v2  ;;  %v2704_v4 = vmul.f32 -1.442695, %v1586_v2 }
 0x73c   :  { %2911 = vpow2.f32 %v2704_v4 }
 0x740   :  { %v2910_v3 = vpop.eup %2909 }
 0x741   :  { %1612 = vrot.lane.b32.xlu2 %v2910_v3, %s2984_s6 }
 0x742   :  { %v2912_v5 = vpop.eup %2911 }
 0x743   :  { %v1590_v7 = vadd.f32 1.0, %v2912_v5 }
 0x745   :  { %2913 = vrcp.f32 %v1590_v7  ;;  %v1602_v17 = vand.u32 2147483648, %v1590_v7  ;;  %vm1596_vm10 = vweird.f32 %v1590_v7  ;;  %v1600_v18 = vand.u32 2147483647, %v1590_v7 }
 0x747   :  { %v1603_v20 = vor.u32 1.1754944e-38, %v1602_v17  ;;  %vm1601_vm12 = vcmp.eq.f32.partialorder %v1600_v18, 8.507059e+37 }
 0x74b   :  { %v2914_v8 = vpop.eup %2913 }
 0x74c   :  { %v1592_v11 = vmul.f32 %v2914_v8, %v1590_v7  ;;  %vm1597_vm9 = vweird.f32 %v2914_v8 }
 0x74d   :  { %vm1598_vm11 = vmor %vm1596_vm10, %vm1597_vm9 }
 0x74e   :  { %v1593_v12 = vsub.f32 1.0, %v1592_v11 }
 0x750   :  { %v1594_v14 = vmul.f32 %v2914_v8, %v1593_v12 }
 0x752   :  { %v1595_v16 = vadd.f32 %v2914_v8, %v1594_v14 }
 0x754   :  { %v1599_v50 = vsel %vm1598_vm11, %v2914_v8, %v1595_v16 }
 0x755   :  { %v1604_v22 = vsel %vm1601_vm12, %v1603_v20, %v1599_v50 }
 0x756   :  { %v1610_v25 = vmul.f32 %v1608_v24, %v1604_v22 }
 0x79b   :  { %v1613_v21 = vpop.permute.xlu2 %1612 }
 0x79c   :  { %v1615_v23 = vmul.f32 %v1613_v21, %v1604_v22 }
 0x79e   :  { %1617 = vrot.lane.b32.xlu0 %v1615_v23, %s2985_s8 }
 0x810   :  { %v1618_v26 = vpop.permute.xlu0 %1617 }
 0x811   :  { %v1620_v27 = vadd.f32 %v1618_v26, %v1610_v25 }
 0x813   :  { %2915 = vtanh.f32 %v1620_v27  ;;  %v1678_v47 = vrot.slane %v1620_v27, 6 }
 0x819   :  { %v2916_v28 = vpop.eup %2915 }
 0x81a   :  { %1623 = vrot.lane.b32.xlu1 %v2916_v28, %s2984_s6 }
 0x88c   :  { %v1624_v29 = vpop.permute.xlu1 %1623 }
 0x88d   :  { %v1626_v30 = vmul.f32 %v1624_v29, %v1604_v22 }
 0x88f   :  { %v1628_v31 = vrot.slane %v1626_v30, 4 }
 0x891   :  { %1629 = vrot.lane.b32.xlu2 %v1628_v31, %s2985_s8 }
 0x8eb   :  { %v1630_v32 = vpop.permute.xlu2 %1629 }
 0x8ec   :  { %2705 = vmatmul.msk.f32.vlgmr.msra.gmra.mxu1 %vm1426_vm4, %v1630_v32 }
 0x969   :  { %v1650_v33 = vpop.f32.mrf.mxu1 }
 0x96a   :  { %v1654_v34 = vrot.slane %v1650_v33, 2 }
 0x96c   :  { %v1656_v35 = vadd.f32 %v1654_v34, %v4127_v13 }
 0x96e   :  { %2917 = vtanh.f32 %v1656_v35  ;;  %v2706_v6 = vmul.f32 -1.442695, %v1656_v35 }
 0x970   :  { %2919 = vpow2.f32 %v2706_v6 }
 0x974   :  { %v2918_v36 = vpop.eup %2917 }
 0x975   :  { %1682 = vrot.lane.b32.xlu0 %v2918_v36, %s2984_s6 }
 0x976   :  { %v2920_v15 = vpop.eup %2919 }
 0x977   :  { %v1660_v37 = vadd.f32 1.0, %v2920_v15 }
 0x979   :  { %2921 = vrcp.f32 %v1660_v37  ;;  %v1672_v41 = vand.u32 2147483648, %v1660_v37  ;;  %vm1666_vm14 = vweird.f32 %v1660_v37  ;;  %v1670_v42 = vand.u32 2147483647, %v1660_v37 }
 0x97b   :  { %v1673_v43 = vor.u32 1.1754944e-38, %v1672_v41  ;;  %vm1671_vm0 = vcmp.eq.f32.partialorder %v1670_v42, 8.507059e+37 }
 0x97f   :  { %v2922_v10 = vpop.eup %2921 }
 0x980   :  { %v1662_v19 = vmul.f32 %v2922_v10, %v1660_v37  ;;  %vm1667_vm13 = vweird.f32 %v2922_v10 }
 0x981   :  { %vm1668_vm15 = vmor %vm1666_vm14, %vm1667_vm13 }
 0x982   :  { %v1663_v38 = vsub.f32 1.0, %v1662_v19 }
 0x984   :  { %v1664_v39 = vmul.f32 %v2922_v10, %v1663_v38 }
 0x986   :  { %v1665_v40 = vadd.f32 %v2922_v10, %v1664_v39 }
 0x988   :  { %v1669_v13 = vsel %vm1668_vm15, %v2922_v10, %v1665_v40 }
 0x989   :  { %v1674_v45 = vsel %vm1671_vm0, %v1673_v43, %v1669_v13 }
 0x98a   :  { %v1680_v48 = vmul.f32 %v1678_v47, %v1674_v45 }
 0x9e7   :  { %v1683_v44 = vpop.permute.xlu0 %1682 }
 0x9e8   :  { %v1685_v46 = vmul.f32 %v1683_v44, %v1674_v45 }
 0x9ea   :  { %1687 = vrot.lane.b32.xlu1 %v1685_v46, %s2985_s8 }
 0xa5c   :  { %v1688_v49 = vpop.permute.xlu1 %1687 }
 0xa5d   :  { %v1690_v51 = vadd.f32 %v1688_v49, %v1680_v48 }
 0xa5f   :  { %2923 = vtanh.f32 %v1690_v51  ;;  %v1745_v17 = vrot.slane %v1690_v51, 6 }
 0xa65   :  { %v2924_v52 = vpop.eup %2923 }
 0xa66   :  { %1693 = vrot.lane.b32.xlu2 %v2924_v52, %s2984_s6 }
 0xac0   :  { %v1694_v53 = vpop.permute.xlu2 %1693 }
 0xac1   :  { %v1696_v54 = vmul.f32 %v1694_v53, %v1674_v45 }
 0xac3   :  { %v1698_v55 = vrot.slane %v1696_v54, 6 }
 0xac5   :  { %1699 = vrot.lane.b32.xlu0 %v1698_v55, %s2985_s8 }
 0xb37   :  { %v1700_v56 = vpop.permute.xlu0 %1699 }
 0xb38   :  { %2707 = vmatmul.msk.f32.vlgmr.msra.gmra.mxu2 %vm1426_vm4, %v1700_v56 }
 0xbbb   :  { %v1720_v59 = vpop.f32.mrf.mxu2 }
 0xbbc   :  { %v1723_v60 = vadd.f32 %v1720_v59, %v4158_v58 }
 0xbbe   :  { %2925 = vtanh.f32 %v1723_v60  ;;  %v2708_v62 = vmul.f32 -1.442695, %v1723_v60 }
 0xbc0   :  { %2927 = vpow2.f32 %v2708_v62 }
 0xbc4   :  { %v2926_v61 = vpop.eup %2925 }
 0xbc5   :  { %1749 = vrot.lane.b32.xlu1 %v2926_v61, %s2984_s6 }
 0xbc6   :  { %v2928_v63 = vpop.eup %2927 }
 0xbc7   :  { %v1727_v0 = vadd.f32 1.0, %v2928_v63 }
 0xbc9   :  { %2929 = vrcp.f32 %v1727_v0  ;;  %v1739_v9 = vand.u32 2147483648, %v1727_v0  ;;  %vm1733_vm2 = vweird.f32 %v1727_v0  ;;  %v1737_v7 = vand.u32 2147483647, %v1727_v0 }
 0xbcb   :  { %v1740_v11 = vor.u32 1.1754944e-38, %v1739_v9  ;;  %vm1738_vm5 = vcmp.eq.f32.partialorder %v1737_v7, 8.507059e+37 }
 0xbcf   :  { %v2930_v1 = vpop.eup %2929 }
 0xbd0   :  { %v1729_v2 = vmul.f32 %v2930_v1, %v1727_v0  ;;  %vm1734_vm1 = vweird.f32 %v2930_v1 }
 0xbd1   :  { %vm1735_vm3 = vmor %vm1733_vm2, %vm1734_vm1 }
 0xbd2   :  { %v1730_v3 = vsub.f32 1.0, %v1729_v2 }
 0xbd4   :  { %v1731_v4 = vmul.f32 %v2930_v1, %v1730_v3 }
 0xbd6   :  { %v1732_v5 = vadd.f32 %v2930_v1, %v1731_v4 }
 0xbd8   :  { %v1736_v8 = vsel %vm1735_vm3, %v2930_v1, %v1732_v5 }
 0xbd9   :  { %v1741_v14 = vsel %vm1738_vm5, %v1740_v11, %v1736_v8 }
 0xbda   :  { %v1747_v18 = vmul.f32 %v1745_v17, %v1741_v14 }
 0xc37   :  { %v1750_v12 = vpop.permute.xlu1 %1749 }
 0xc38   :  { %v1752_v16 = vmul.f32 %v1750_v12, %v1741_v14 }
 0xc3a   :  { %1754 = vrot.lane.b32.xlu2 %v1752_v16, %s2985_s8 }
 0xc94   :  { %v1755_v50 = vpop.permute.xlu2 %1754 }
 0xc95   :  { %v1757_v20 = vadd.f32 %v1755_v50, %v1747_v18 }
 0xc97   :  { %2931 = vtanh.f32 %v1757_v20  ;;  %v1814_v40 = vrot.slane %v1757_v20, 6 }
 0xc9d   :  { %v2932_v21 = vpop.eup %2931 }
 0xc9e   :  { %1760 = vrot.lane.b32.xlu0 %v2932_v21, %s2984_s6 }
 0xd10   :  { %v1761_v22 = vpop.permute.xlu0 %1760 }
 0xd11   :  { %v1763_v23 = vmul.f32 %v1761_v22, %v1741_v14 }
 0xd13   :  { %1765 = vrot.lane.b32.xlu1 %v1763_v23, %s2985_s8 }
 0xd85   :  { %v1766_v24 = vpop.permute.xlu1 %1765 }
 0xd86   :  { %2709 = vmatmul.msk.f32.vlgmr.msra.gmra.mxu3 %vm1426_vm4, %v1766_v24 }
 0xe09   :  { %v1786_v25 = vpop.f32.mrf.mxu3 }
 0xe0a   :  { %v1790_v26 = vrot.slane %v1786_v25, 6 }
 0xe0c   :  { %v1792_v27 = vadd.f32 %v1790_v26, %v4158_v58 }
 0xe0e   :  { %2933 = vtanh.f32 %v1792_v27  ;;  %v2710_v29 = vmul.f32 -1.442695, %v1792_v27 }
 0xe10   :  { %2935 = vpow2.f32 %v2710_v29 }
 0xe14   :  { %v2934_v28 = vpop.eup %2933 }
 0xe15   :  { %1818 = vrot.lane.b32.xlu2 %v2934_v28, %s2984_s6 }
 0xe16   :  { %v2936_v30 = vpop.eup %2935 }
 0xe17   :  { %v1796_v31 = vadd.f32 1.0, %v2936_v30 }
 0xe19   :  { %2937 = vrcp.f32 %v1796_v31  ;;  %v1808_v6 = vand.u32 2147483648, %v1796_v31  ;;  %vm1802_vm7 = vweird.f32 %v1796_v31  ;;  %v1806_v15 = vand.u32 2147483647, %v1796_v31 }
 0xe1b   :  { %v1809_v10 = vor.u32 1.1754944e-38, %v1808_v6  ;;  %vm1807_vm9 = vcmp.eq.f32.partialorder %v1806_v15, 8.507059e+37 }
 0xe1f   :  { %v2938_v32 = vpop.eup %2937 }
 0xe20   :  { %v1798_v33 = vmul.f32 %v2938_v32, %v1796_v31  ;;  %vm1803_vm6 = vweird.f32 %v2938_v32 }
 0xe21   :  { %vm1804_vm8 = vmor %vm1802_vm7, %vm1803_vm6 }
 0xe22   :  { %v1799_v34 = vsub.f32 1.0, %v1798_v33 }
 0xe24   :  { %v1800_v35 = vmul.f32 %v2938_v32, %v1799_v34 }
 0xe26   :  { %v1801_v36 = vadd.f32 %v2938_v32, %v1800_v35 }
 0xe28   :  { %v1805_v37 = vsel %vm1804_vm8, %v2938_v32, %v1801_v36 }
 0xe29   :  { %v1810_v38 = vsel %vm1807_vm9, %v1809_v10, %v1805_v37 }
 0xe2a   :  { %v1816_v41 = vmul.f32 %v1814_v40, %v1810_v38  ;;  %v1973_v40 = vld [vmem:[%s4212_s10] sm:$0xff] }
 0xe6f   :  { %v1819_v19 = vpop.permute.xlu2 %1818 }
 0xe70   :  { %v1821_v39 = vmul.f32 %v1819_v19, %v1810_v38  ;;  %v1976_v19 = vld [vmem:[%s4212_s10 + $0x18] sm:$0xff] }
 0xe71   :  { %1999 = vmatpush.msrb.mxu3 %v1976_v19 }
 0xe72   :  { %1823 = vrot.lane.b32.xlu0 %v1821_v39, %s2985_s8  ;;  %v1974_v39 = vld [vmem:[%s4212_s10 + $0x8] sm:$0xff] }
 0xee4   :  { %v1824_v42 = vpop.permute.xlu0 %1823 }
 0xee5   :  { %v1826_v13 = vadd.f32 %v1824_v42, %v1816_v41 }
 0xee7   :  { %2939 = vtanh.f32 %v1826_v13  ;;  %v1884_v5 = vrot.slane %v1826_v13, 6 }
 0xeed   :  { %v2940_v43 = vpop.eup %2939 }
 0xeee   :  { %1829 = vrot.lane.b32.xlu1 %v2940_v43, %s2984_s6 }
 0xf60   :  { %v1830_v44 = vpop.permute.xlu1 %1829 }
 0xf61   :  { %v1832_v45 = vmul.f32 %v1830_v44, %v1810_v38  ;;  %v1975_v38 = vld [vmem:[%s4212_s10 + $0x10] sm:$0xff]  ;;  %v2892_v44 = vld [vmem:[%s4213_s11] ss:$0 sm:$0xff]  ;;  %s2015_s10 = sshll.u32 %s4214_s12, 4  ;;  %s2016_s10 = int_to_ptr.hbm [resolvable:$true] %s2015_s10 }
 0xf62   :  { %2000 = vmatpush.msrb.mxu3 %v1975_v38 }
 0xf63   :  { %v1834_v46 = vrot.slane %v1832_v45, 2 }
 0xf64   :  { %2001 = vmatpush.msrb.mxu3 %v1974_v39 }
 0xf65   :  { %1835 = vrot.lane.b32.xlu2 %v1834_v46, %s2985_s8 }
 0xf66   :  { %2002 = vmatpush.msrb.mxu3 %v1973_v40 }
 0xfbf   :  { %v1836_v47 = vpop.permute.xlu2 %1835 }
 0xfc0   :  { %2711 = vmatmul.msk.f32.vlgmr.msrb.gmra.mxu1 %vm1426_vm4, %v1836_v47 }
0x103d   :  { %v1856_v48 = vpop.f32.mrf.mxu1 }
0x103e   :  { %v1860_v49 = vrot.slane %v1856_v48, 4 }
0x1040   :  { %v1862_v51 = vadd.f32 %v1860_v49, %v4158_v58 }
0x1042   :  { %2941 = vtanh.f32 %v1862_v51  ;;  %v2712_v53 = vmul.f32 -1.442695, %v1862_v51 }
0x1044   :  { %2943 = vpow2.f32 %v2712_v53 }
0x1048   :  { %v2942_v52 = vpop.eup %2941 }
0x1049   :  { %1888 = vrot.lane.b32.xlu0 %v2942_v52, %s2984_s6 }
0x104a   :  { %v2944_v54 = vpop.eup %2943 }
0x104b   :  { %v1866_v55 = vadd.f32 1.0, %v2944_v54 }
0x104d   :  { %2945 = vrcp.f32 %v1866_v55  ;;  %v1878_v62 = vand.u32 2147483648, %v1866_v55  ;;  %vm1872_vm11 = vweird.f32 %v1866_v55  ;;  %v1876_v63 = vand.u32 2147483647, %v1866_v55 }
0x104f   :  { %v1879_v1 = vor.u32 1.1754944e-38, %v1878_v62  ;;  %vm1877_vm13 = vcmp.eq.f32.partialorder %v1876_v63, 8.507059e+37 }
0x1053   :  { %v2946_v56 = vpop.eup %2945 }
0x1054   :  { %v1868_v57 = vmul.f32 %v2946_v56, %v1866_v55  ;;  %vm1873_vm10 = vweird.f32 %v2946_v56 }
0x1055   :  { %vm1874_vm12 = vmor %vm1872_vm11, %vm1873_vm10 }
0x1056   :  { %v1869_v59 = vsub.f32 1.0, %v1868_v57 }
0x1058   :  { %v1870_v60 = vmul.f32 %v2946_v56, %v1869_v59 }
0x105a   :  { %v1871_v61 = vadd.f32 %v2946_v56, %v1870_v60 }
0x105c   :  { %v1875_v0 = vsel %vm1874_vm12, %v2946_v56, %v1871_v61 }
0x105d   :  { %v1880_v3 = vsel %vm1877_vm13, %v1879_v1, %v1875_v0 }
0x105e   :  { %v1886_v9 = vmul.f32 %v1884_v5, %v1880_v3 }
0x10bb   :  { %v1889_v2 = vpop.permute.xlu0 %1888 }
0x10bc   :  { %v1891_v4 = vmul.f32 %v1889_v2, %v1880_v3 }
0x10be   :  { %1893 = vrot.lane.b32.xlu1 %v1891_v4, %s2985_s8 }
0x1130   :  { %v1894_v7 = vpop.permute.xlu1 %1893 }
0x1131   :  { %v1896_v8 = vadd.f32 %v1894_v7, %v1886_v9 }
0x1133   :  { %2947 = vtanh.f32 %v1896_v8  ;;  %v1954_v36 = vrot.slane %v1896_v8, 6 }
0x1139   :  { %v2948_v11 = vpop.eup %2947 }
0x113a   :  { %1899 = vrot.lane.b32.xlu2 %v2948_v11, %s2984_s6 }
0x1194   :  { %v1900_v12 = vpop.permute.xlu2 %1899 }
0x1195   :  { %v1902_v14 = vmul.f32 %v1900_v12, %v1880_v3 }
0x1197   :  { %v1904_v16 = vrot.slane %v1902_v14, 4 }
0x1199   :  { %1905 = vrot.lane.b32.xlu0 %v1904_v16, %s2985_s8 }
0x120b   :  { %v1906_v17 = vpop.permute.xlu0 %1905 }
0x120c   :  { %2713 = vmatmul.msk.f32.vlgmr.msrb.gmra.mxu2 %vm1426_vm4, %v1906_v17 }
0x128f   :  { %v1926_v18 = vpop.f32.mrf.mxu2 }
0x1290   :  { %v1930_v50 = vrot.slane %v1926_v18, 2 }
0x1292   :  { %v1932_v20 = vadd.f32 %v1930_v50, %v4158_v58 }
0x1294   :  { %2949 = vtanh.f32 %v1932_v20  ;;  %v2714_v22 = vmul.f32 -1.442695, %v1932_v20 }
0x1296   :  { %2951 = vpow2.f32 %v2714_v22 }
0x129a   :  { %v2950_v21 = vpop.eup %2949 }
0x129b   :  { %1958 = vrot.lane.b32.xlu1 %v2950_v21, %s2984_s6 }
0x129c   :  { %v2952_v23 = vpop.eup %2951 }
0x129d   :  { %v1936_v24 = vadd.f32 1.0, %v2952_v23 }
0x129f   :  { %2953 = vrcp.f32 %v1936_v24  ;;  %v1948_v30 = vand.u32 2147483648, %v1936_v24  ;;  %vm1942_vm15 = vweird.f32 %v1936_v24  ;;  %v1946_v31 = vand.u32 2147483647, %v1936_v24 }
0x12a1   :  { %v1949_v32 = vor.u32 1.1754944e-38, %v1948_v30  ;;  %vm1947_vm1 = vcmp.eq.f32.partialorder %v1946_v31, 8.507059e+37 }
0x12a5   :  { %v2954_v25 = vpop.eup %2953 }
0x12a6   :  { %v1938_v26 = vmul.f32 %v2954_v25, %v1936_v24  ;;  %vm1943_vm14 = vweird.f32 %v2954_v25 }
0x12a7   :  { %vm1944_vm0 = vmor %vm1942_vm15, %vm1943_vm14 }
0x12a8   :  { %v1939_v27 = vsub.f32 1.0, %v1938_v26 }
0x12aa   :  { %v1940_v28 = vmul.f32 %v2954_v25, %v1939_v27 }
0x12ac   :  { %v1941_v29 = vadd.f32 %v2954_v25, %v1940_v28 }
0x12ae   :  { %v1945_v58 = vsel %vm1944_vm0, %v2954_v25, %v1941_v29 }
0x12af   :  { %v1950_v34 = vsel %vm1947_vm1, %v1949_v32, %v1945_v58 }
0x12b0   :  { %v1956_v6 = vmul.f32 %v1954_v36, %v1950_v34 }
0x130d   :  { %v1959_v33 = vpop.permute.xlu1 %1958 }
0x130e   :  { %v1961_v35 = vmul.f32 %v1959_v33, %v1950_v34 }
0x1310   :  { %1963 = vrot.lane.b32.xlu2 %v1961_v35, %s2985_s8 }
0x136a   :  { %v1964_v15 = vpop.permute.xlu2 %1963 }
0x136b   :  { %v1966_v37 = vadd.f32 %v1964_v15, %v1956_v6 }
0x136d   :  { %2955 = vtanh.f32 %v1966_v37 }
0x1373   :  { %v2956_v10 = vpop.eup %2955 }
0x1374   :  { %1969 = vrot.lane.b32.xlu0 %v2956_v10, %s2984_s6 }
0x13e6   :  { %v1970_v41 = vpop.permute.xlu0 %1969 }
0x13e7   :  { %v1972_v42 = vmul.f32 %v1970_v41, %v1950_v34 }
0x13e9   :  { %v1982_v13 = vrot.slane %v1972_v42, 6 }
0x13eb   :  { %1983 = vrot.lane.b32.xlu1 %v1982_v13, %s2985_s8 }
0x145d   :  { %v1984_v43 = vpop.permute.xlu1 %1983 }
0x145e   :  { %2715 = vmatmul.msk.f32.vlgmr.msrb.gmra.mxu3 %vm1426_vm4, %v1984_v43 }
0x14e1   :  { %v2004_v45 = vpop.f32.mrf.mxu3 }
0x14e2   :  { %v2005_v46 = vadd.f32 %v2892_v44, %v2004_v45 }
0x14e4   :  { %2007 = vst [vmem:[#allocation2] sm:$0x3] %v2005_v46 }
0x14e5   :  { %2018 = dma.vmem_to_hbm [thread:$0]  %s2014_s26, 32, %s2016_s10, [#allocation3]  }
0x14e6   :  { %2981 = dma.done.wait [#allocation3], 32  }
0x14e7   :  { %2982 = vsyncadd [#allocation3], 4294967264 }
0x14e8   :  { %2023 = vsyncpa [#allocation3], 1 }

</bundles_post_ra>
